<compile_context>
chip_gen: v7x
topology: tpu7x:2x2x1
jax: 0.10.0
libtpu: 0.0.40
codegen_flags: <defaults>
</compile_context>

<pallas_src>
import functools

import jax
import jax.numpy as jnp
from jax import lax
from jax.experimental import pallas as pl
from jax.experimental.pallas import tpu as pltpu


def residual_kernel(xp_ref, w3_ref, w1_ref, o_ref):
    # xp_ref: [1, H+2, W+2, Cin]  f32 zero-padded NHWC image (one batch element)
    # w3_ref: [9, Cin, Chid]      per-tap 3x3 weights (compute dtype), ky-major/kx-minor
    # w1_ref: [Chid, Cout]        1x1 weights (compute dtype)
    # o_ref:  [1, H*W, Cout]      f32 output (pixels on sublanes, channels on lanes)
    _, Hp, Wp, Cin = xp_ref.shape
    H, W = Hp - 2, Wp - 2
    HW = H * W
    Chid = w3_ref.shape[2]
    cdtype = w3_ref.dtype

    # 3x3 conv of ReLU(x): nine tap dot-products accumulated in f32.  Each tap
    # is an offset slice of the padded VMEM block (no HBM patch stream); the
    # [H, W, Cin] -> [H*W, Cin] reshape only collapses leading dims (free).
    acc = jnp.zeros((HW, Chid), jnp.float32)
    t = 0
    for ky in range(3):
        for kx in range(3):
            tap = xp_ref[0, ky:ky + H, kx:kx + W, :].reshape(HW, Cin)      # f32
            a = jnp.maximum(tap, jnp.float32(0.0)).astype(cdtype)          # ReLU, cast for MXU
            acc = acc + jnp.dot(a, w3_ref[t],
                                preferred_element_type=jnp.float32)        # [HW, Chid]
            t += 1

    # ReLU then 1x1 conv (channel matmul), f32 accumulation.
    h = jnp.maximum(acc, jnp.float32(0.0)).astype(w1_ref.dtype)
    y = jnp.dot(h, w1_ref[...], preferred_element_type=jnp.float32)        # [HW, Cout]

    # Exact f32 skip-add: pre-ReLU x is the center window of the padded block.
    residual = xp_ref[0, 1:1 + H, 1:1 + W, :].reshape(HW, Cin)             # f32
    o_ref[0] = (residual + y).astype(o_ref.dtype)


def residual_forward(x_nchw, w3_oihw, w1_oihw, *, compute_dtype=jnp.bfloat16):
    """x_nchw: [N, Cin, H, W]; w3_oihw: [Chid, Cin, 3, 3]; w1_oihw: [Cout, Chid, 1, 1]."""
    N, Cin, H, W = x_nchw.shape
    Chid = w3_oihw.shape[0]
    Cout = w1_oihw.shape[0]
    assert Cout == Cin, "Residual skip-add requires in_channels == num_hiddens"

    # NCHW -> NHWC and zero-pad by 1 on H/W (XLA fuses these into one pass).
    # These two transposes exist only because the module API is NCHW; an NHWC
    # entry point would remove them.
    x_nhwc = jnp.transpose(x_nchw, (0, 2, 3, 1))
    xp = jnp.pad(x_nhwc, ((0, 0), (1, 1), (1, 1), (0, 0)))                 # [N, H+2, W+2, Cin] f32
    Hp, Wp = H + 2, W + 2

    # Weights: OIHW -> [9, Cin, Chid] per-tap (ky-major, kx-minor) and [Chid, Cout],
    # cast once to the MXU compute dtype (bf16 by default).
    w3_taps = jnp.transpose(w3_oihw, (2, 3, 1, 0)).reshape(9, Cin, Chid).astype(compute_dtype)
    w1_mat = jnp.transpose(w1_oihw[:, :, 0, 0], (1, 0)).astype(compute_dtype)

    # Explicit VMEM budget (blocks are double-buffered), capped v7x-safe.
    in_bytes = Hp * Wp * Cin * 4
    out_bytes = H * W * Cout * 4
    w_bytes = (9 * Cin * Chid + Chid * Cout) * jnp.dtype(compute_dtype).itemsize
    est = 2 * (in_bytes + out_bytes) + w_bytes
    vmem_limit = int(min(48 * 2**20, max(16 * 2**20, 8 * est)))

    out_flat = pl.pallas_call(
        residual_kernel,
        out_shape=jax.ShapeDtypeStruct((N, H * W, Cout), x_nchw.dtype),
        grid=(N,),
        in_specs=[
            pl.BlockSpec((1, Hp, Wp, Cin), lambda b: (b, 0, 0, 0)),
            pl.BlockSpec((9, Cin, Chid), lambda b: (0, 0, 0)),
            pl.BlockSpec((Chid, Cout), lambda b: (0, 0)),
        ],
        out_specs=pl.BlockSpec((1, H * W, Cout), lambda b: (b, 0, 0)),
        compiler_params=pltpu.CompilerParams(
            dimension_semantics=("parallel",),
            vmem_limit_bytes=vmem_limit),
    )(xp, w3_taps, w1_mat)

    out = out_flat.reshape(N, H, W, Cout)              # contiguous, metadata-only
    return jnp.transpose(out, (0, 3, 1, 2))            # NHWC -> NCHW (module API)


def residual_reference(x_nchw, w3_oihw, w1_oihw):
    """Pure-JAX reference mirroring the PyTorch module (NCHW, f32)."""
    h = jnp.maximum(x_nchw, 0.0)
    h = lax.conv_general_dilated(
        h, w3_oihw, window_strides=(1, 1), padding="SAME",
        dimension_numbers=("NCHW", "OIHW", "NCHW"))
    h = jnp.maximum(h, 0.0)
    h = lax.conv_general_dilated(
        h, w1_oihw, window_strides=(1, 1), padding="VALID",
        dimension_numbers=("NCHW", "OIHW", "NCHW"))
    return x_nchw + h


if __name__ == "__main__":
    # Residual requires in_channels == num_hiddens for the skip-add.
    batch, in_channels, num_hiddens, num_residual_hiddens, spatial = 2, 8, 8, 4, 16

    key = jax.random.PRNGKey(0)
    kx, k3, k1 = jax.random.split(key, 3)
    x = jax.random.normal(kx, (batch, in_channels, spatial, spatial), jnp.float32)
    w3 = 0.1 * jax.random.normal(
        k3, (num_residual_hiddens, in_channels, 3, 3), jnp.float32)   # Conv2d 3x3, no bias
    w1 = 0.1 * jax.random.normal(
        k1, (num_hiddens, num_residual_hiddens, 1, 1), jnp.float32)   # Conv2d 1x1, no bias

    ref = residual_reference(x, w3, w1)

    # Default path: bf16 MXU inputs, f32 accumulation, exact f32 skip-add.
    fwd = jax.jit(residual_forward)
    out = jax.block_until_ready(fwd(x, w3, w1))
    assert out.shape == ref.shape and out.dtype == ref.dtype
    assert jnp.allclose(out, ref, atol=1e-2, rtol=1e-2)

    # f32 MXU path: matches the reference to f32 round-off.
    fwd_f32 = jax.jit(functools.partial(residual_forward, compute_dtype=jnp.float32))
    out_f32 = jax.block_until_ready(fwd_f32(x, w3, w1))
    assert jnp.allclose(out_f32, ref, atol=1e-5, rtol=1e-5)

    print("KERNEL_OK")
</pallas_src>

<mosaic_0001>
module attributes {stable_mosaic.version = 11 : i64} {
  func.func @residual_kernel(%arg0: i32, %arg1: memref<1x18x18x8xf32, #tpu.memory_space<vmem>>, %arg2: memref<9x8x4xbf16, #tpu.memory_space<vmem>>, %arg3: memref<4x8xbf16, #tpu.memory_space<vmem>>, %arg4: memref<1x256x8xf32, #tpu.memory_space<vmem>>) attributes {dimension_semantics = [#tpu.dimension_semantics<parallel>], iteration_bounds = array<i64: 2>, scalar_prefetch = 0 : i64, scratch_operands = 0 : i64, tpu.core_type = #tpu.core_type<tc>, window_params = [{transform_indices = @transform_0, window_bounds = array<i64: 1, 18, 18, 8>}, {pipeline_mode = #tpu.pipeline_mode<synchronous>, transform_indices = @transform_1, window_bounds = array<i64: 9, 8, 4>}, {pipeline_mode = #tpu.pipeline_mode<synchronous>, transform_indices = @transform_2, window_bounds = array<i64: 4, 8>}, {transform_indices = @transform_3, window_bounds = array<i64: 1, 256, 8>}]} {
    %cst = arith.constant 0.000000e+00 : f32
    %0 = vector.broadcast %cst : f32 to vector<256x4xf32>
    %c0 = arith.constant 0 : index
    %c0_0 = arith.constant 0 : index
    %c0_1 = arith.constant 0 : index
    %c0_2 = arith.constant 0 : index
    %1 = vector.load %arg1[%c0, %c0_0, %c0_1, %c0_2] : memref<1x18x18x8xf32, #tpu.memory_space<vmem>>, vector<1x16x16x8xf32>
    %2 = vector.shape_cast %1 : vector<1x16x16x8xf32> to vector<16x16x8xf32>
    %3 = vector.shape_cast %2 : vector<16x16x8xf32> to vector<256x8xf32>
    %cst_3 = arith.constant 0.000000e+00 : f32
    %4 = vector.broadcast %cst_3 : f32 to vector<256x8xf32>
    %5 = arith.maximumf %3, %4 : vector<256x8xf32>
    %6 = arith.truncf %5 : vector<256x8xf32> to vector<256x8xbf16>
    %c0_4 = arith.constant 0 : index
    %c0_5 = arith.constant 0 : index
    %c0_6 = arith.constant 0 : index
    %7 = vector.load %arg2[%c0_4, %c0_5, %c0_6] : memref<9x8x4xbf16, #tpu.memory_space<vmem>>, vector<1x8x4xbf16>
    %8 = vector.shape_cast %7 : vector<1x8x4xbf16> to vector<8x4xbf16>
    %cst_7 = arith.constant dense<0.000000e+00> : vector<256x4xf32>
    %9 = tpu.matmul %6, %8, %cst_7 {dimension_numbers = #tpu.dot_dimension_numbers<[1], [0], [0], [1], [0, 0, 1, 1], [], []>} : vector<256x8xbf16>, vector<8x4xbf16>, vector<256x4xf32> -> vector<256x4xf32>
    %10 = arith.addf %0, %9 : vector<256x4xf32>
    %c0_8 = arith.constant 0 : index
    %c0_9 = arith.constant 0 : index
    %c1 = arith.constant 1 : index
    %c0_10 = arith.constant 0 : index
    %11 = vector.load %arg1[%c0_8, %c0_9, %c1, %c0_10] : memref<1x18x18x8xf32, #tpu.memory_space<vmem>>, vector<1x16x16x8xf32>
    %12 = vector.shape_cast %11 : vector<1x16x16x8xf32> to vector<16x16x8xf32>
    %13 = vector.shape_cast %12 : vector<16x16x8xf32> to vector<256x8xf32>
    %cst_11 = arith.constant 0.000000e+00 : f32
    %14 = vector.broadcast %cst_11 : f32 to vector<256x8xf32>
    %15 = arith.maximumf %13, %14 : vector<256x8xf32>
    %16 = arith.truncf %15 : vector<256x8xf32> to vector<256x8xbf16>
    %c1_12 = arith.constant 1 : index
    %c0_13 = arith.constant 0 : index
    %c0_14 = arith.constant 0 : index
    %17 = vector.load %arg2[%c1_12, %c0_13, %c0_14] : memref<9x8x4xbf16, #tpu.memory_space<vmem>>, vector<1x8x4xbf16>
    %18 = vector.shape_cast %17 : vector<1x8x4xbf16> to vector<8x4xbf16>
    %cst_15 = arith.constant dense<0.000000e+00> : vector<256x4xf32>
    %19 = tpu.matmul %16, %18, %cst_15 {dimension_numbers = #tpu.dot_dimension_numbers<[1], [0], [0], [1], [0, 0, 1, 1], [], []>} : vector<256x8xbf16>, vector<8x4xbf16>, vector<256x4xf32> -> vector<256x4xf32>
    %20 = arith.addf %10, %19 : vector<256x4xf32>
    %c0_16 = arith.constant 0 : index
    %c0_17 = arith.constant 0 : index
    %c2 = arith.constant 2 : index
    %c0_18 = arith.constant 0 : index
    %21 = vector.load %arg1[%c0_16, %c0_17, %c2, %c0_18] : memref<1x18x18x8xf32, #tpu.memory_space<vmem>>, vector<1x16x16x8xf32>
    %22 = vector.shape_cast %21 : vector<1x16x16x8xf32> to vector<16x16x8xf32>
    %23 = vector.shape_cast %22 : vector<16x16x8xf32> to vector<256x8xf32>
    %cst_19 = arith.constant 0.000000e+00 : f32
    %24 = vector.broadcast %cst_19 : f32 to vector<256x8xf32>
    %25 = arith.maximumf %23, %24 : vector<256x8xf32>
    %26 = arith.truncf %25 : vector<256x8xf32> to vector<256x8xbf16>
    %c2_20 = arith.constant 2 : index
    %c0_21 = arith.constant 0 : index
    %c0_22 = arith.constant 0 : index
    %27 = vector.load %arg2[%c2_20, %c0_21, %c0_22] : memref<9x8x4xbf16, #tpu.memory_space<vmem>>, vector<1x8x4xbf16>
    %28 = vector.shape_cast %27 : vector<1x8x4xbf16> to vector<8x4xbf16>
    %cst_23 = arith.constant dense<0.000000e+00> : vector<256x4xf32>
    %29 = tpu.matmul %26, %28, %cst_23 {dimension_numbers = #tpu.dot_dimension_numbers<[1], [0], [0], [1], [0, 0, 1, 1], [], []>} : vector<256x8xbf16>, vector<8x4xbf16>, vector<256x4xf32> -> vector<256x4xf32>
    %30 = arith.addf %20, %29 : vector<256x4xf32>
    %c0_24 = arith.constant 0 : index
    %c1_25 = arith.constant 1 : index
    %c0_26 = arith.constant 0 : index
    %c0_27 = arith.constant 0 : index
    %31 = vector.load %arg1[%c0_24, %c1_25, %c0_26, %c0_27] : memref<1x18x18x8xf32, #tpu.memory_space<vmem>>, vector<1x16x16x8xf32>
    %32 = vector.shape_cast %31 : vector<1x16x16x8xf32> to vector<16x16x8xf32>
    %33 = vector.shape_cast %32 : vector<16x16x8xf32> to vector<256x8xf32>
    %cst_28 = arith.constant 0.000000e+00 : f32
    %34 = vector.broadcast %cst_28 : f32 to vector<256x8xf32>
    %35 = arith.maximumf %33, %34 : vector<256x8xf32>
    %36 = arith.truncf %35 : vector<256x8xf32> to vector<256x8xbf16>
    %c3 = arith.constant 3 : index
    %c0_29 = arith.constant 0 : index
    %c0_30 = arith.constant 0 : index
    %37 = vector.load %arg2[%c3, %c0_29, %c0_30] : memref<9x8x4xbf16, #tpu.memory_space<vmem>>, vector<1x8x4xbf16>
    %38 = vector.shape_cast %37 : vector<1x8x4xbf16> to vector<8x4xbf16>
    %cst_31 = arith.constant dense<0.000000e+00> : vector<256x4xf32>
    %39 = tpu.matmul %36, %38, %cst_31 {dimension_numbers = #tpu.dot_dimension_numbers<[1], [0], [0], [1], [0, 0, 1, 1], [], []>} : vector<256x8xbf16>, vector<8x4xbf16>, vector<256x4xf32> -> vector<256x4xf32>
    %40 = arith.addf %30, %39 : vector<256x4xf32>
    %c0_32 = arith.constant 0 : index
    %c1_33 = arith.constant 1 : index
    %c1_34 = arith.constant 1 : index
    %c0_35 = arith.constant 0 : index
    %41 = vector.load %arg1[%c0_32, %c1_33, %c1_34, %c0_35] : memref<1x18x18x8xf32, #tpu.memory_space<vmem>>, vector<1x16x16x8xf32>
    %42 = vector.shape_cast %41 : vector<1x16x16x8xf32> to vector<16x16x8xf32>
    %43 = vector.shape_cast %42 : vector<16x16x8xf32> to vector<256x8xf32>
    %cst_36 = arith.constant 0.000000e+00 : f32
    %44 = vector.broadcast %cst_36 : f32 to vector<256x8xf32>
    %45 = arith.maximumf %43, %44 : vector<256x8xf32>
    %46 = arith.truncf %45 : vector<256x8xf32> to vector<256x8xbf16>
    %c4 = arith.constant 4 : index
    %c0_37 = arith.constant 0 : index
    %c0_38 = arith.constant 0 : index
    %47 = vector.load %arg2[%c4, %c0_37, %c0_38] : memref<9x8x4xbf16, #tpu.memory_space<vmem>>, vector<1x8x4xbf16>
    %48 = vector.shape_cast %47 : vector<1x8x4xbf16> to vector<8x4xbf16>
    %cst_39 = arith.constant dense<0.000000e+00> : vector<256x4xf32>
    %49 = tpu.matmul %46, %48, %cst_39 {dimension_numbers = #tpu.dot_dimension_numbers<[1], [0], [0], [1], [0, 0, 1, 1], [], []>} : vector<256x8xbf16>, vector<8x4xbf16>, vector<256x4xf32> -> vector<256x4xf32>
    %50 = arith.addf %40, %49 : vector<256x4xf32>
    %c0_40 = arith.constant 0 : index
    %c1_41 = arith.constant 1 : index
    %c2_42 = arith.constant 2 : index
    %c0_43 = arith.constant 0 : index
    %51 = vector.load %arg1[%c0_40, %c1_41, %c2_42, %c0_43] : memref<1x18x18x8xf32, #tpu.memory_space<vmem>>, vector<1x16x16x8xf32>
    %52 = vector.shape_cast %51 : vector<1x16x16x8xf32> to vector<16x16x8xf32>
    %53 = vector.shape_cast %52 : vector<16x16x8xf32> to vector<256x8xf32>
    %cst_44 = arith.constant 0.000000e+00 : f32
    %54 = vector.broadcast %cst_44 : f32 to vector<256x8xf32>
    %55 = arith.maximumf %53, %54 : vector<256x8xf32>
    %56 = arith.truncf %55 : vector<256x8xf32> to vector<256x8xbf16>
    %c5 = arith.constant 5 : index
    %c0_45 = arith.constant 0 : index
    %c0_46 = arith.constant 0 : index
    %57 = vector.load %arg2[%c5, %c0_45, %c0_46] : memref<9x8x4xbf16, #tpu.memory_space<vmem>>, vector<1x8x4xbf16>
    %58 = vector.shape_cast %57 : vector<1x8x4xbf16> to vector<8x4xbf16>
    %cst_47 = arith.constant dense<0.000000e+00> : vector<256x4xf32>
    %59 = tpu.matmul %56, %58, %cst_47 {dimension_numbers = #tpu.dot_dimension_numbers<[1], [0], [0], [1], [0, 0, 1, 1], [], []>} : vector<256x8xbf16>, vector<8x4xbf16>, vector<256x4xf32> -> vector<256x4xf32>
    %60 = arith.addf %50, %59 : vector<256x4xf32>
    %c0_48 = arith.constant 0 : index
    %c2_49 = arith.constant 2 : index
    %c0_50 = arith.constant 0 : index
    %c0_51 = arith.constant 0 : index
    %61 = vector.load %arg1[%c0_48, %c2_49, %c0_50, %c0_51] : memref<1x18x18x8xf32, #tpu.memory_space<vmem>>, vector<1x16x16x8xf32>
    %62 = vector.shape_cast %61 : vector<1x16x16x8xf32> to vector<16x16x8xf32>
    %63 = vector.shape_cast %62 : vector<16x16x8xf32> to vector<256x8xf32>
    %cst_52 = arith.constant 0.000000e+00 : f32
    %64 = vector.broadcast %cst_52 : f32 to vector<256x8xf32>
    %65 = arith.maximumf %63, %64 : vector<256x8xf32>
    %66 = arith.truncf %65 : vector<256x8xf32> to vector<256x8xbf16>
    %c6 = arith.constant 6 : index
    %c0_53 = arith.constant 0 : index
    %c0_54 = arith.constant 0 : index
    %67 = vector.load %arg2[%c6, %c0_53, %c0_54] : memref<9x8x4xbf16, #tpu.memory_space<vmem>>, vector<1x8x4xbf16>
    %68 = vector.shape_cast %67 : vector<1x8x4xbf16> to vector<8x4xbf16>
    %cst_55 = arith.constant dense<0.000000e+00> : vector<256x4xf32>
    %69 = tpu.matmul %66, %68, %cst_55 {dimension_numbers = #tpu.dot_dimension_numbers<[1], [0], [0], [1], [0, 0, 1, 1], [], []>} : vector<256x8xbf16>, vector<8x4xbf16>, vector<256x4xf32> -> vector<256x4xf32>
    %70 = arith.addf %60, %69 : vector<256x4xf32>
    %c0_56 = arith.constant 0 : index
    %c2_57 = arith.constant 2 : index
    %c1_58 = arith.constant 1 : index
    %c0_59 = arith.constant 0 : index
    %71 = vector.load %arg1[%c0_56, %c2_57, %c1_58, %c0_59] : memref<1x18x18x8xf32, #tpu.memory_space<vmem>>, vector<1x16x16x8xf32>
    %72 = vector.shape_cast %71 : vector<1x16x16x8xf32> to vector<16x16x8xf32>
    %73 = vector.shape_cast %72 : vector<16x16x8xf32> to vector<256x8xf32>
    %cst_60 = arith.constant 0.000000e+00 : f32
    %74 = vector.broadcast %cst_60 : f32 to vector<256x8xf32>
    %75 = arith.maximumf %73, %74 : vector<256x8xf32>
    %76 = arith.truncf %75 : vector<256x8xf32> to vector<256x8xbf16>
    %c7 = arith.constant 7 : index
    %c0_61 = arith.constant 0 : index
    %c0_62 = arith.constant 0 : index
    %77 = vector.load %arg2[%c7, %c0_61, %c0_62] : memref<9x8x4xbf16, #tpu.memory_space<vmem>>, vector<1x8x4xbf16>
    %78 = vector.shape_cast %77 : vector<1x8x4xbf16> to vector<8x4xbf16>
    %cst_63 = arith.constant dense<0.000000e+00> : vector<256x4xf32>
    %79 = tpu.matmul %76, %78, %cst_63 {dimension_numbers = #tpu.dot_dimension_numbers<[1], [0], [0], [1], [0, 0, 1, 1], [], []>} : vector<256x8xbf16>, vector<8x4xbf16>, vector<256x4xf32> -> vector<256x4xf32>
    %80 = arith.addf %70, %79 : vector<256x4xf32>
    %c0_64 = arith.constant 0 : index
    %c2_65 = arith.constant 2 : index
    %c2_66 = arith.constant 2 : index
    %c0_67 = arith.constant 0 : index
    %81 = vector.load %arg1[%c0_64, %c2_65, %c2_66, %c0_67] : memref<1x18x18x8xf32, #tpu.memory_space<vmem>>, vector<1x16x16x8xf32>
    %82 = vector.shape_cast %81 : vector<1x16x16x8xf32> to vector<16x16x8xf32>
    %83 = vector.shape_cast %82 : vector<16x16x8xf32> to vector<256x8xf32>
    %cst_68 = arith.constant 0.000000e+00 : f32
    %84 = vector.broadcast %cst_68 : f32 to vector<256x8xf32>
    %85 = arith.maximumf %83, %84 : vector<256x8xf32>
    %86 = arith.truncf %85 : vector<256x8xf32> to vector<256x8xbf16>
    %c8 = arith.constant 8 : index
    %c0_69 = arith.constant 0 : index
    %c0_70 = arith.constant 0 : index
    %87 = vector.load %arg2[%c8, %c0_69, %c0_70] : memref<9x8x4xbf16, #tpu.memory_space<vmem>>, vector<1x8x4xbf16>
    %88 = vector.shape_cast %87 : vector<1x8x4xbf16> to vector<8x4xbf16>
    %cst_71 = arith.constant dense<0.000000e+00> : vector<256x4xf32>
    %89 = tpu.matmul %86, %88, %cst_71 {dimension_numbers = #tpu.dot_dimension_numbers<[1], [0], [0], [1], [0, 0, 1, 1], [], []>} : vector<256x8xbf16>, vector<8x4xbf16>, vector<256x4xf32> -> vector<256x4xf32>
    %90 = arith.addf %80, %89 : vector<256x4xf32>
    %cst_72 = arith.constant 0.000000e+00 : f32
    %91 = vector.broadcast %cst_72 : f32 to vector<256x4xf32>
    %92 = arith.maximumf %90, %91 : vector<256x4xf32>
    %93 = arith.truncf %92 : vector<256x4xf32> to vector<256x4xbf16>
    %c0_73 = arith.constant 0 : index
    %c0_74 = arith.constant 0 : index
    %94 = vector.load %arg3[%c0_73, %c0_74] : memref<4x8xbf16, #tpu.memory_space<vmem>>, vector<4x8xbf16>
    %cst_75 = arith.constant dense<0.000000e+00> : vector<256x8xf32>
    %95 = tpu.matmul %93, %94, %cst_75 {dimension_numbers = #tpu.dot_dimension_numbers<[1], [0], [0], [1], [0, 0, 1, 1], [], []>} : vector<256x4xbf16>, vector<4x8xbf16>, vector<256x8xf32> -> vector<256x8xf32>
    %c0_76 = arith.constant 0 : index
    %c1_77 = arith.constant 1 : index
    %c1_78 = arith.constant 1 : index
    %c0_79 = arith.constant 0 : index
    %96 = vector.load %arg1[%c0_76, %c1_77, %c1_78, %c0_79] : memref<1x18x18x8xf32, #tpu.memory_space<vmem>>, vector<1x16x16x8xf32>
    %97 = vector.shape_cast %96 : vector<1x16x16x8xf32> to vector<16x16x8xf32>
    %98 = vector.shape_cast %97 : vector<16x16x8xf32> to vector<256x8xf32>
    %99 = arith.addf %98, %95 : vector<256x8xf32>
    %c0_80 = arith.constant 0 : index
    %c0_81 = arith.constant 0 : index
    %c0_82 = arith.constant 0 : index
    %100 = vector.load %arg4[%c0_80, %c0_81, %c0_82] : memref<1x256x8xf32, #tpu.memory_space<vmem>>, vector<1x256x8xf32>
    %101 = vector.shape_cast %100 : vector<1x256x8xf32> to vector<256x8xf32>
    %102 = vector.shape_cast %99 : vector<256x8xf32> to vector<1x256x8xf32>
    tpu.vector_store %arg4[%c0_80, %c0_81, %c0_82], %102 {strides = array<i32>} : memref<1x256x8xf32, #tpu.memory_space<vmem>>, vector<1x256x8xf32>,
    return
  }
  func.func @transform_0(%arg0: i32) -> (i32, i32, i32, i32) {
    %c0_i32 = arith.constant 0 : i32
    %c0_i32_0 = arith.constant 0 : i32
    %c0_i32_1 = arith.constant 0 : i32
    %c0_i32_2 = arith.constant 0 : i32
    return %arg0, %c0_i32, %c0_i32_0, %c0_i32_1 : i32, i32, i32, i32
  }
  func.func @transform_1(%arg0: i32) -> (i32, i32, i32) {
    %c0_i32 = arith.constant 0 : i32
    %c0_i32_0 = arith.constant 0 : i32
    %c0_i32_1 = arith.constant 0 : i32
    %c0_i32_2 = arith.constant 0 : i32
    return %c0_i32, %c0_i32_0, %c0_i32_1 : i32, i32, i32
  }
  func.func @transform_2(%arg0: i32) -> (i32, i32) {
    %c0_i32 = arith.constant 0 : i32
    %c0_i32_0 = arith.constant 0 : i32
    %c0_i32_1 = arith.constant 0 : i32
    return %c0_i32, %c0_i32_0 : i32, i32
  }
  func.func @transform_3(%arg0: i32) -> (i32, i32, i32) {
    %c0_i32 = arith.constant 0 : i32
    %c0_i32_0 = arith.constant 0 : i32
    %c0_i32_1 = arith.constant 0 : i32
    return %arg0, %c0_i32, %c0_i32_0 : i32, i32, i32
  }
}

</mosaic_0001>

<bundles_post_ra>
// kernel: residual_forward.1
= control target key start
LH: loop header
LB: loop body
LE: loop exit
PB: predicated region body
PF: predicated region fallthrough
CT: control target
= control target key end

     0   :  { %s4643_s12 = smov 0   ;;  %s5353_s0 = inlined_call_operand.vmem [shape: f32[2,18,18,8], index: 0, kind: input, shape index: {}]   ;;  %s5354_s1 = inlined_call_operand.vmem [shape: bf16[9,8,4], index: 1, kind: input, shape index: {}]   ;;  %s5355_s2 = inlined_call_operand.vmem [shape: bf16[4,8], index: 2, kind: input, shape index: {}]   ;;  %s5356_s3 = inlined_call_operand.vmem [shape: f32[2,256,8], index: 3, kind: output, shape index: {}]  }
   0x1 LB: > { %s3427_s13 = sadd.s32 4294967295, %s4621_s12   ;;  %p3431_p0 = scmp.ge.s32.totalorder %s4621_s12, 1  ;;  %s4621_s12 = sphi %s4643_s12, %s13_s12  }
   0x2   : > { %p137_p1 = scmp.lt.s32.totalorder %s4621_s12, 3 }
   0x4   : > { %p138_p2 = pnand %p3431_p0, %p137_p1 }
   0x5   : > { %vm384_vm0 = vcmask (!%p138_p2), 1043456   ;;  %v3566_v0 = vld [vmem:[%s5354_s1 + $0x10] sm:$0xf] (!%p138_p2)  ;;  %v3435_v1 = vld [vmem:[%s5354_s1 + $0x4] sm:$0xf] (!%p138_p2)  ;;  %p161_p3 = scmp.lt.s32.totalorder (!%p138_p2), %s3427_s13, 1 }
   0x6   : > { %141 = sbr.rel (%p138_p2) target bundleno = 776 (0x308), region = 32  ;;  %4568 = vmatprep.subr.msk.bf16.mxu0 (!%p138_p2), %vm384_vm0, %v3566_v0  ;;  %4564 = vmatprep.subr.msk.bf16.mxu1 (!%p138_p2), %vm384_vm0, %v3435_v1  ;;  %v1545_v2 = vsel (!%p138_p2), %vm384_vm0, %v3566_v0, 0  ;;  %v386_v3 = vsel (!%p138_p2), %vm384_vm0, %v3435_v1, 0  ;;  %v3615_v4 = vld [vmem:[%s5354_s1 + $0x14] sm:$0xf] (!%p138_p2)  ;;  %vm335_vm1 = vcmask (!%p138_p2), 64512  }
   0x7   : > { %4105 = vmatpush3.bf16.msra.mxu0 (!%p138_p2), %v1545_v2  ;;  %3969 = vmatpush3.bf16.msra.mxu1 (!%p138_p2), %v386_v3  ;;  %v252_v5 = vld [vmem:[%s5354_s1] sm:$0xf] (!%p138_p2)  ;;  %v1871_v27 = vsel (!%p138_p2), %vm384_vm0, %v3615_v4, 0  ;;  %v4697_v32 = vld [vmem:[%s5354_s1 + $0x18] sm:$0xf] (!%p138_p2)  ;;  %vm3143_vm2 = vcmask (!%p138_p2), 1041408  }
   0x8   : > { %4569 = vmatprep.subr.msk.bf16.mxu0 (!%p138_p2), %vm384_vm0, %v3615_v4  ;;  %4565 = vmatprep.subr.msk.bf16.mxu1 (!%p138_p2), %vm384_vm0, %v252_v5  ;;  %v598_v31 = vsel (!%p138_p2), %vm384_vm0, %v252_v5, 0  ;;  %v4704_v35 = vld [vmem:[%s5354_s1 + $0x8] sm:$0xf] (!%p138_p2)  ;;  %vm3094_vm3 = vcmask (!%p138_p2), 31744  }
   0xd   : > { %s5358_s13 = smov (!%p161_p3, %s3427_s13), 1 }
   0xe   : > { %s4574_s22 = smul.u32 432, %s5358_s13  ;;  %s3797_s11 = sshll.u32 %s5358_s13, 8 }
   0xf   : > { %s5252_s16 = scalar_lea.vmem %s5356_s3, %s3797_s11 }
  0x10   : > { %s4675_s25 = scalar_lea.vmem %s5353_s0, %s4574_s22 }
  0x11   : > { %v253_v6 = vld [vmem:[%s4675_s25 + $0x1] sm:$0xff]  ;;  %v254_v7 = vld [vmem:[%s4675_s25 + $0x9] sm:$0xff]  ;;  %v3534_v8 = vld [vmem:[%s4675_s25 + $0x19] sm:$0xff] }
  0x12   : > { %v285_v9 = vmax.f32 %v253_v6, 0.0  ;;  %v286_v10 = vmax.f32 %v254_v7, 0.0  ;;  %v3535_v11 = vld [vmem:[%s4675_s25 + $0x21] sm:$0xff]  ;;  %v1446_v12 = vmax.f32 %v3534_v8, 0.0  ;;  %v3536_v13 = vld [vmem:[%s4675_s25 + $0x31] sm:$0xff]  ;;  %v3537_v14 = vld [vmem:[%s4675_s25 + $0x39] sm:$0xff] }
  0x13   : > { %v1447_v15 = vmax.f32 %v3535_v11, 0.0  ;;  %v1448_v16 = vmax.f32 %v3536_v13, 0.0  ;;  %v1449_v17 = vmax.f32 %v3537_v14, 0.0  ;;  %v3538_v18 = vld [vmem:[%s4675_s25 + $0x49] sm:$0xff]  ;;  %v3539_v19 = vld [vmem:[%s4675_s25 + $0x51] sm:$0xff]  ;;  %v3540_v25 = vld [vmem:[%s4675_s25 + $0x61] sm:$0xff] }
  0x14   : > { %v317_v20 = vpack.c.bf16 %v286_v10, %v285_v9  ;;  %v1450_v21 = vmax.f32 %v3538_v18, 0.0  ;;  %v1451_v22 = vmax.f32 %v3539_v19, 0.0  ;;  %v3541_v26 = vld [vmem:[%s4675_s25 + $0x69] sm:$0xff]  ;;  %v3542_v29 = vld [vmem:[%s4675_s25 + $0x79] sm:$0xff]  ;;  %v3543_v30 = vld [vmem:[%s4675_s25 + $0x81] sm:$0xff]  ;;  %v1452_v33 = vmax.f32 %v3540_v25, 0.0 }
  0x15   : > { %v1478_v23 = vpack.c.bf16 %v1447_v15, %v1446_v12  ;;  %v1479_v24 = vpack.c.bf16 %v1449_v17, %v1448_v16  ;;  %v1453_v34 = vmax.f32 %v3541_v26, 0.0  ;;  %v1454_v36 = vmax.f32 %v3542_v29, 0.0  ;;  %v3544_v40 = vld [vmem:[%s4675_s25 + $0x91] sm:$0xff]  ;;  %v3545_v41 = vld [vmem:[%s4675_s25 + $0x99] sm:$0xff]  ;;  %v3546_v42 = vld [vmem:[%s4675_s25 + $0xa9] sm:$0xff] }
  0x16   : > { %3970 = vmatprep.mubr.msk.bf16.mxu1 %vm335_vm1, %v317_v20  ;;  %v1480_v28 = vpack.c.bf16 %v1451_v22, %v1450_v21  ;;  %v1455_v37 = vmax.f32 %v3543_v30, 0.0  ;;  %v3547_v43 = vld [vmem:[%s4675_s25 + $0xb1] sm:$0xff]  ;;  %v1456_v44 = vmax.f32 %v3544_v40, 0.0  ;;  %v1457_v45 = vmax.f32 %v3545_v41, 0.0  ;;  %v3548_v50 = vld [vmem:[%s4675_s25 + $0xc1] sm:$0xff]  ;;  %v3549_v51 = vld [vmem:[%s4675_s25 + $0xc9] sm:$0xff] }
  0x17   : > { %4106 = vmatprep.mubr.msk.bf16.mxu0 %vm335_vm1, %v1478_v23  ;;  %3971 = vmatmul.mubr.msk.bf16.vlgmr.msra.gmra.mrb[0].mxu1 %vm335_vm1, %v1478_v23  ;;  %v1481_v38 = vpack.c.bf16 %v1453_v34, %v1452_v33  ;;  %v1458_v46 = vmax.f32 %v3546_v42, 0.0  ;;  %v1459_v47 = vmax.f32 %v3547_v43, 0.0  ;;  %v3550_v52 = vld [vmem:[%s4675_s25 + $0xd9] sm:$0xff]  ;;  %v3551_v53 = vld [vmem:[%s4675_s25 + $0xe1] sm:$0xff]  ;;  %v1460_v54 = vmax.f32 %v3548_v50, 0.0  ;;  %v3552_v60 = vld [vmem:[%s4675_s25 + $0xf1] sm:$0xff] }
  0x18   : > { %4107 = vmatmul.mubr.msk.bf16.vlgmr.msra.gmra.mrb[0].mxu0 %vm335_vm1, %v1479_v24  ;;  %3974 = vmatprep.mubr.msk.bf16.mxu1 %vm335_vm1, %v1479_v24  ;;  %v1482_v39 = vpack.c.bf16 %v1455_v37, %v1454_v36  ;;  %v1483_v48 = vpack.c.bf16 %v1457_v45, %v1456_v44  ;;  %v1461_v55 = vmax.f32 %v3549_v51, 0.0  ;;  %v1462_v56 = vmax.f32 %v3550_v52, 0.0  ;;  %v3553_v61 = vld [vmem:[%s4675_s25 + $0xf9] sm:$0xff]  ;;  %v3554_v62 = vld [vmem:[%s4675_s25 + $0x109] sm:$0xff]  ;;  %v3555_v63 = vld [vmem:[%s4675_s25 + $0x111] sm:$0xff] }
  0x19   : > { %4139 = vmatpush3.bf16.msra.mxu0 %v1871_v27  ;;  %4110 = vmatprep.mubr.msk.bf16.mxu0 %vm335_vm1, %v1480_v28  ;;  %v1484_v49 = vpack.c.bf16 %v1459_v47, %v1458_v46  ;;  %v1463_v57 = vmax.f32 %v3551_v53, 0.0  ;;  %v1464_v0 = vmax.f32 %v3552_v60, 0.0  ;;  %v1465_v1 = vmax.f32 %v3553_v61, 0.0  ;;  %v3556_v6 = vld [vmem:[%s4675_s25 + $0x121] sm:$0xff]  ;;  %v3557_v7 = vld [vmem:[%s4675_s25 + $0x129] sm:$0xff]  ;;  %v3558_v8 = vld [vmem:[%s4675_s25 + $0x139] sm:$0xff] }
  0x1a   : > { %4003 = vmatpush3.bf16.msra.mxu1 %v598_v31  ;;  %4570 = vmatprep.subr.msk.bf16.mxu0 %vm384_vm0, %v4697_v32  ;;  %v1485_v58 = vpack.c.bf16 %v1461_v55, %v1460_v54  ;;  %v1466_v2 = vmax.f32 %v3554_v62, 0.0  ;;  %v1467_v3 = vmax.f32 %v3555_v63, 0.0  ;;  %v3559_v9 = vld [vmem:[%s4675_s25 + $0x141] sm:$0xff]  ;;  %v1468_v10 = vmax.f32 %v3556_v6, 0.0  ;;  %v3560_v16 = vld [vmem:[%s4675_s25 + $0x151] sm:$0xff]  ;;  %v3561_v17 = vld [vmem:[%s4675_s25 + $0x159] sm:$0xff] }
  0x1b   : > { %4566 = vmatprep.subr.msk.bf16.mxu1 %vm384_vm0, %v4704_v35  ;;  %v1486_v59 = vpack.c.bf16 %v1463_v57, %v1462_v56  ;;  %v1487_v4 = vpack.c.bf16 %v1465_v1, %v1464_v0  ;;  %v1469_v11 = vmax.f32 %v3557_v7, 0.0  ;;  %v1470_v12 = vmax.f32 %v3558_v8, 0.0  ;;  %v3562_v18 = vld [vmem:[%s4675_s25 + $0x169] sm:$0xff]  ;;  %v3563_v19 = vld [vmem:[%s4675_s25 + $0x171] sm:$0xff]  ;;  %v3564_v25 = vld [vmem:[%s4675_s25 + $0x181] sm:$0xff] }
  0x1c   : > { %v1488_v5 = vpack.c.bf16 %v1467_v3, %v1466_v2  ;;  %v1471_v13 = vmax.f32 %v3559_v9, 0.0  ;;  %v1472_v20 = vmax.f32 %v3560_v16, 0.0  ;;  %v1473_v21 = vmax.f32 %v3561_v17, 0.0  ;;  %v3565_v27 = vld [vmem:[%s4675_s25 + $0x189] sm:$0xff]  ;;  %v3583_v30 = vld [vmem:[%s4675_s25 + $0x1a] sm:$0xff]  ;;  %v3585_v44 = vld [vmem:[%s4675_s25 + $0x32] sm:$0xff] }
  0x1d   : > { %v1489_v14 = vpack.c.bf16 %v1469_v11, %v1468_v10  ;;  %v1474_v22 = vmax.f32 %v3562_v18, 0.0  ;;  %v1475_v23 = vmax.f32 %v3563_v19, 0.0  ;;  %v173_v29 = vld [vmem:[%s4675_s25 + $0x8] sm:$0xff]  ;;  %v1476_v33 = vmax.f32 %v3564_v25, 0.0  ;;  %v174_v42 = vld [vmem:[%s4675_s25 + $0x18] sm:$0xff]  ;;  %v175_v43 = vld [vmem:[%s4675_s25 + $0x20] sm:$0xff] }
  0x1e   : > { %v1490_v15 = vpack.c.bf16 %v1471_v13, %v1470_v12  ;;  %v1491_v24 = vpack.c.bf16 %v1473_v21, %v1472_v20  ;;  %v3584_v31 = vld [vmem:[%s4675_s25 + $0x22] sm:$0xff]  ;;  %v1477_v34 = vmax.f32 %v3565_v27, 0.0  ;;  %v205_v37 = vmax.f32 %v173_v29, 0.0  ;;  %v3586_v46 = vld [vmem:[%s4675_s25 + $0x3a] sm:$0xff]  ;;  %v176_v47 = vld [vmem:[%s4675_s25 + $0x30] sm:$0xff] }
  0x1f   : > { %3975 = vmatmul.mubr.msk.bf16.gmra.mrb[4].mxu1 %vm335_vm1, %v1480_v28  ;;  %v1492_v26 = vpack.c.bf16 %v1475_v23, %v1474_v22  ;;  %v172_v28 = vld [vmem:[%s4675_s25] sm:$0xff]  ;;  %v3588_v50 = vld [vmem:[%s4675_s25 + $0x52] sm:$0xff]  ;;  %v206_v51 = vmax.f32 %v174_v42, 0.0  ;;  %v207_v52 = vmax.f32 %v175_v43, 0.0  ;;  %v1774_v53 = vmax.f32 %v3585_v44, 0.0  ;;  %v178_v62 = vld [vmem:[%s4675_s25 + $0x48] sm:$0xff] }
  0x20   : > { %4111 = vmatmul.mubr.msk.bf16.gmra.mrb[4].mxu0 %vm335_vm1, %v1481_v38  ;;  %3978 = vmatprep.mubr.msk.bf16.mxu1 %vm335_vm1, %v1481_v38  ;;  %v204_v36 = vmax.f32 %v172_v28, 0.0  ;;  %v1772_v38 = vmax.f32 %v3583_v30, 0.0  ;;  %v1493_v40 = vpack.c.bf16 %v1477_v34, %v1476_v33  ;;  %v1775_v54 = vmax.f32 %v3586_v46, 0.0  ;;  %v179_v63 = vld [vmem:[%s4675_s25 + $0x50] sm:$0xff]  ;;  %v3589_v0 = vld [vmem:[%s4675_s25 + $0x62] sm:$0xff]  ;;  %v3591_v6 = vld [vmem:[%s4675_s25 + $0x7a] sm:$0xff] }
  0x21   : > { %4114 = vmatprep.mubr.msk.bf16.mxu0 %vm335_vm1, %v1482_v39  ;;  %v208_v55 = vmax.f32 %v176_v47, 0.0  ;;  %v3590_v2 = vld [vmem:[%s4675_s25 + $0x6a] sm:$0xff]  ;;  %v180_v3 = vld [vmem:[%s4675_s25 + $0x60] sm:$0xff]  ;;  %v210_v8 = vmax.f32 %v178_v62, 0.0  ;;  %v211_v9 = vmax.f32 %v179_v63, 0.0  ;;  %v892_v10 = vsel %vm384_vm0, %v4704_v35, 0 }
  0x22   : > { %v236_v41 = vpack.c.bf16 %v205_v37, %v204_v36  ;;  %v4778_v60 = vpack.c.bf16 %v1775_v54, %v1774_v53  ;;  %v3592_v7 = vld [vmem:[%s4675_s25 + $0x82] sm:$0xff]  ;;  %v4801_v11 = vld [vmem:[%s5354_s1 + $0x1c] sm:$0xf]  ;;  %v1779_v12 = vmax.f32 %v3590_v2, 0.0  ;;  %v212_v13 = vmax.f32 %v180_v3, 0.0  ;;  %v3593_v22 = vld [vmem:[%s4675_s25 + $0x92] sm:$0xff] }
  0x23   : > { %v4810_v35 = vld [vmem:[%s5354_s1 + $0xc] sm:$0xf]  ;;  %v1781_v16 = vmax.f32 %v3592_v7, 0.0  ;;  %v4816_v17 = vpack.c.bf16 %v211_v9, %v210_v8  ;;  %v182_v20 = vld [vmem:[%s4675_s25 + $0x78] sm:$0xff]  ;;  %v183_v21 = vld [vmem:[%s4675_s25 + $0x80] sm:$0xff] }
  0x24   : > { %v184_v25 = vld [vmem:[%s4675_s25 + $0x90] sm:$0xff]  ;;  %v214_v29 = vmax.f32 %v182_v20, 0.0  ;;  %v215_v30 = vmax.f32 %v183_v21, 0.0  ;;  %v186_v42 = vld [vmem:[%s4675_s25 + $0xa8] sm:$0xff]  ;;  %v190_v3 = vld [vmem:[%s4675_s25 + $0xd8] sm:$0xff] }
  0x25   : > { %v3595_v27 = vld [vmem:[%s4675_s25 + $0xaa] sm:$0xff]  ;;  %v3596_v28 = vld [vmem:[%s4675_s25 + $0xb2] sm:$0xff]  ;;  %v216_v34 = vmax.f32 %v184_v25, 0.0  ;;  %v3597_v44 = vld [vmem:[%s4675_s25 + $0xc2] sm:$0xff] }
  0x26   : > { %v1784_v37 = vmax.f32 %v3595_v27, 0.0  ;;  %v187_v43 = vld [vmem:[%s4675_s25 + $0xb0] sm:$0xff]  ;;  %v1786_v54 = vmax.f32 %v3597_v44, 0.0  ;;  %v3602_v7 = vld [vmem:[%s4675_s25 + $0xfa] sm:$0xff]  ;;  %v194_v27 = vld [vmem:[%s4675_s25 + $0x108] sm:$0xff] }
  0x27   : > { %3979 = vmatmul.mubr.msk.bf16.gmra.mrb[8].mxu1 %vm335_vm1, %v1482_v39  ;;  %v1773_v39 = vmax.f32 %v3584_v31, 0.0  ;;  %v1782_v31 = vmax.f32 %v3593_v22, 0.0  ;;  %v3598_v47 = vld [vmem:[%s4675_s25 + $0xca] sm:$0xff]  ;;  %v219_v53 = vmax.f32 %v187_v43, 0.0  ;;  %v193_v9 = vld [vmem:[%s4675_s25 + $0xf8] sm:$0xff] }
  0x28   : > { %4115 = vmatmul.mubr.msk.bf16.gmra.mrb[8].mxu0 %vm335_vm1, %v1483_v48  ;;  %3982 = vmatprep.mubr.msk.bf16.mxu1 %vm335_vm1, %v1483_v48  ;;  %v177_v48 = vld [vmem:[%s4675_s25 + $0x38] sm:$0xff]  ;;  %v192_v8 = vld [vmem:[%s4675_s25 + $0xf0] sm:$0xff]  ;;  %v225_v20 = vmax.f32 %v193_v9, 0.0 }
  0x29   : > { %4118 = vmatprep.mubr.msk.bf16.mxu0 %vm335_vm1, %v1484_v49  ;;  %v4764_v45 = vpack.c.bf16 %v1773_v39, %v1772_v38  ;;  %v209_v56 = vmax.f32 %v177_v48, 0.0  ;;  %v1785_v38 = vmax.f32 %v3596_v28, 0.0  ;;  %v4842_v39 = vpack.c.bf16 %v215_v30, %v214_v29  ;;  %v188_v48 = vld [vmem:[%s4675_s25 + $0xc0] sm:$0xff]  ;;  %v195_v28 = vld [vmem:[%s4675_s25 + $0x110] sm:$0xff] }
  0x2a   : > { %v3605_v29 = vld [vmem:[%s4675_s25 + $0x122] sm:$0xff] }
  0x2b   : > { %v4780_v61 = vpack.c.bf16 %v209_v56, %v208_v55  ;;  %v4851_v46 = vpack.c.bf16 %v1785_v38, %v1784_v37  ;;  %v1787_v55 = vmax.f32 %v3598_v47, 0.0  ;;  %v220_v56 = vmax.f32 %v188_v48, 0.0  ;;  %v3608_v37 = vld [vmem:[%s4675_s25 + $0x142] sm:$0xff] }
  0x2c   : > { %v226_v38 = vmax.f32 %v194_v27, 0.0  ;;  %v1794_v43 = vmax.f32 %v3605_v29, 0.0  ;;  %v3613_v27 = vld [vmem:[%s4675_s25 + $0x182] sm:$0xff]  ;;  %v3614_v29 = vld [vmem:[%s4675_s25 + $0x18a] sm:$0xff] }
  0x2f   : > { %3983 = vmatmul.mubr.msk.bf16.gmra.mrb[12].mxu1 %vm335_vm1, %v1484_v49  ;;  %v3587_v49 = vld [vmem:[%s4675_s25 + $0x4a] sm:$0xff] }
  0x30   : > { %4119 = vmatmul.mubr.msk.bf16.gmra.mrb[12].mxu0 %vm335_vm1, %v1485_v58  ;;  %3986 = vmatprep.mubr.msk.bf16.mxu1 %vm335_vm1, %v1485_v58  ;;  %v1776_v57 = vmax.f32 %v3587_v49, 0.0  ;;  %v1777_v58 = vmax.f32 %v3588_v50, 0.0  ;;  %v189_v49 = vld [vmem:[%s4675_s25 + $0xc8] sm:$0xff]  ;;  %v3599_v50 = vld [vmem:[%s4675_s25 + $0xda] sm:$0xff] }
  0x31   : > { %4122 = vmatprep.mubr.msk.bf16.mxu0 %vm335_vm1, %v1486_v59 }
  0x32   : > { %v4785_v1 = vpack.c.bf16 %v1777_v58, %v1776_v57  ;;  %v221_v57 = vmax.f32 %v189_v49, 0.0  ;;  %v1788_v58 = vmax.f32 %v3599_v50, 0.0  ;;  %v1797_v50 = vmax.f32 %v3608_v37, 0.0 }
  0x33   : > { %v1802_v37 = vmax.f32 %v3613_v27, 0.0 }
  0x34   : > { %v4870_v2 = vpack.c.bf16 %v221_v57, %v220_v56  ;;  %v3609_v56 = vld [vmem:[%s4675_s25 + $0x152] sm:$0xff] }
  0x35   : > { %v1798_v9 = vmax.f32 %v3609_v56, 0.0  ;;  %v3683_v56 = vld [vmem:[%s4675_s25 + $0x49] sm:$0xff] }
  0x37   : > { %3987 = vmatmul.mubr.msk.bf16.gmra.mrb[16].mxu1 %vm335_vm1, %v1486_v59  ;;  %v4776_v59 = vpack.c.bf16 %v207_v52, %v206_v51  ;;  %v3600_v51 = vld [vmem:[%s4675_s25 + $0xe2] sm:$0xff]  ;;  %v218_v52 = vmax.f32 %v186_v42, 0.0  ;;  %v227_v42 = vmax.f32 %v195_v28, 0.0 }
  0x38   : > { %4123 = vmatmul.mubr.msk.bf16.gmra.mrb[16].mxu0 %vm335_vm1, %v1487_v4  ;;  %3990 = vmatprep.mubr.msk.bf16.mxu1 %vm335_vm1, %v1487_v4  ;;  %v181_v4 = vld [vmem:[%s4675_s25 + $0x68] sm:$0xff]  ;;  %v1789_v62 = vmax.f32 %v3600_v51, 0.0 }
  0x39   : > { %4126 = vmatprep.mubr.msk.bf16.mxu0 %vm335_vm1, %v1488_v5  ;;  %v4866_v63 = vpack.c.bf16 %v219_v53, %v218_v52  ;;  %v4914_v51 = vpack.c.bf16 %v227_v42, %v226_v38  ;;  %v1803_v38 = vmax.f32 %v3614_v29, 0.0 }
  0x3f   : > { %3991 = vmatmul.mubr.msk.bf16.gmra.mrb[20].mxu1 %vm335_vm1, %v1488_v5  ;;  %v2198_v5 = vsel %vm384_vm0, %v4697_v32, 0  ;;  %v1778_v32 = vmax.f32 %v3589_v0, 0.0  ;;  %v4868_v0 = vpack.c.bf16 %v1787_v55, %v1786_v54  ;;  %v198_v54 = vld [vmem:[%s4675_s25 + $0x138] sm:$0xff]  ;;  %v199_v55 = vld [vmem:[%s4675_s25 + $0x140] sm:$0xff] }
  0x40   : > { %4127 = vmatmul.mubr.msk.bf16.gmra.mrb[20].mxu0 %vm335_vm1, %v1489_v14  ;;  %3994 = vmatprep.mubr.msk.bf16.mxu1 %vm335_vm1, %v1489_v14  ;;  %v213_v14 = vmax.f32 %v181_v4, 0.0  ;;  %v191_v4 = vld [vmem:[%s4675_s25 + $0xe0] sm:$0xff] }
  0x41   : > { %4130 = vmatprep.mubr.msk.bf16.mxu0 %vm335_vm1, %v1490_v15  ;;  %v4820_v18 = vpack.c.bf16 %v1779_v12, %v1778_v32  ;;  %v3604_v32 = vld [vmem:[%s4675_s25 + $0x112] sm:$0xff]  ;;  %v222_v12 = vmax.f32 %v190_v3, 0.0 }
  0x42   : > { %v4822_v19 = vpack.c.bf16 %v213_v14, %v212_v13  ;;  %v223_v13 = vmax.f32 %v191_v4, 0.0  ;;  %v1793_v22 = vmax.f32 %v3604_v32, 0.0  ;;  %v201_v3 = vld [vmem:[%s4675_s25 + $0x158] sm:$0xff]  ;;  %v3611_v4 = vld [vmem:[%s4675_s25 + $0x16a] sm:$0xff] }
  0x47   : > { %3995 = vmatmul.mubr.msk.bf16.gmra.mrb[24].mxu1 %vm335_vm1, %v1490_v15  ;;  %v1780_v15 = vmax.f32 %v3591_v6, 0.0  ;;  %v4875_v6 = vpack.c.bf16 %v1789_v62, %v1788_v58  ;;  %v3610_v58 = vld [vmem:[%s4675_s25 + $0x15a] sm:$0xff]  ;;  %v200_v62 = vld [vmem:[%s4675_s25 + $0x150] sm:$0xff] }
  0x48   : > { %4131 = vmatmul.mubr.msk.bf16.gmra.mrb[24].mxu0 %vm335_vm1, %v1491_v24  ;;  %3998 = vmatprep.mubr.msk.bf16.mxu1 %vm335_vm1, %v1491_v24  ;;  %v3594_v24 = vld [vmem:[%s4675_s25 + $0x9a] sm:$0xff]  ;;  %v232_v32 = vmax.f32 %v200_v62, 0.0 }
  0x49   : > { %4134 = vmatprep.mubr.msk.bf16.mxu0 %vm335_vm1, %v1492_v26  ;;  %v4827_v23 = vpack.c.bf16 %v1781_v16, %v1780_v15  ;;  %v1783_v33 = vmax.f32 %v3594_v24, 0.0  ;;  %v1791_v15 = vmax.f32 %v3602_v7, 0.0  ;;  %v224_v16 = vmax.f32 %v192_v8, 0.0  ;;  %v3685_v62 = vld [vmem:[%s4675_s25 + $0x61] sm:$0xff] }
  0x4a   : > { %v4890_v24 = vpack.c.bf16 %v223_v13, %v222_v12  ;;  %v230_v7 = vmax.f32 %v198_v54, 0.0  ;;  %v231_v8 = vmax.f32 %v199_v55, 0.0  ;;  %v233_v12 = vmax.f32 %v201_v3, 0.0  ;;  %v3762_v54 = vld [vmem:[%s5354_s1 + $0x20] sm:$0xf]  ;;  %v3686_v3 = vld [vmem:[%s4675_s25 + $0x69] sm:$0xff] }
  0x4b   : > { %v1800_v13 = vmax.f32 %v3611_v4, 0.0  ;;  %v2427_v4 = vmax.f32 %v3683_v56, 0.0  ;;  %v3703_v56 = vld [vmem:[%s4675_s25 + $0x139] sm:$0xff] }
  0x4f   : > { %3999 = vmatmul.mubr.msk.bf16.gmra.mrb[28].mxu1 %vm335_vm1, %v1492_v26  ;;  %v185_v26 = vld [vmem:[%s4675_s25 + $0x98] sm:$0xff] }
  0x50   : > { %4135 = vmatmul.mubr.msk.bf16.gmra.mrb[28].mxu0 %vm335_vm1, %v1493_v40  ;;  %4004 = vmatprep.mubr.msk.bf16.mxu1 %vm335_vm1, %v236_v41  ;;  %v217_v36 = vmax.f32 %v185_v26, 0.0  ;;  %v4844_v40 = vpack.c.bf16 %v1783_v33, %v1782_v31  ;;  %v4894_v26 = vpack.c.bf16 %v225_v20, %v224_v16  ;;  %v3606_v31 = vld [vmem:[%s4675_s25 + $0x12a] sm:$0xff]  ;;  %v196_v33 = vld [vmem:[%s4675_s25 + $0x120] sm:$0xff]  ;;  %v4942_v20 = vpack.c.bf16 %v233_v12, %v232_v32 }
  0x51   : > { %4140 = vmatprep.mubr.msk.bf16.mxu0 %vm335_vm1, %v4764_v45  ;;  %v1795_v44 = vmax.f32 %v3606_v31, 0.0  ;;  %v228_v47 = vmax.f32 %v196_v33, 0.0  ;;  %v761_v31 = vld [vmem:[%s4675_s25 + $0x2] sm:$0xff]  ;;  %v762_v33 = vld [vmem:[%s4675_s25 + $0xa] sm:$0xff]  ;;  %v3687_v32 = vld [vmem:[%s4675_s25 + $0x79] sm:$0xff] }
  0x52   : > { %v4846_v41 = vpack.c.bf16 %v217_v36, %v216_v34  ;;  %v197_v34 = vld [vmem:[%s4675_s25 + $0x128] sm:$0xff]  ;;  %v3607_v36 = vld [vmem:[%s4675_s25 + $0x13a] sm:$0xff]  ;;  %v793_v42 = vmax.f32 %v761_v31, 0.0 }
  0x53   : > { %v229_v48 = vmax.f32 %v197_v34, 0.0  ;;  %v1796_v49 = vmax.f32 %v3607_v36, 0.0  ;;  %v4916_v52 = vpack.c.bf16 %v1795_v44, %v1794_v43  ;;  %v794_v43 = vmax.f32 %v762_v33, 0.0  ;;  %v3688_v12 = vld [vmem:[%s4675_s25 + $0x81] sm:$0xff] }
  0x55   : > { %v4918_v53 = vpack.c.bf16 %v229_v48, %v228_v47  ;;  %v4923_v57 = vpack.c.bf16 %v1797_v50, %v1796_v49  ;;  %v4962_v47 = vpack.c.bf16 %v1803_v38, %v1802_v37  ;;  %v825_v48 = vpack.c.bf16 %v794_v43, %v793_v42  ;;  %v3694_v37 = vld [vmem:[%s4675_s25 + $0xc9] sm:$0xff] }
  0x56   : > { %v2524_v49 = vsel %vm384_vm0, %v4801_v11, 0  ;;  %v1219_v50 = vsel %vm384_vm0, %v4810_v35, 0  ;;  %v2438_v43 = vmax.f32 %v3694_v37, 0.0  ;;  %v3732_v37 = vld [vmem:[%s4675_s25 + $0x4a] sm:$0xff] }
  0x57   : > { %4005 = vmatmul.mubr.msk.bf16.vlgmr.msra.gmra.mrb[0].mxu1 %vm335_vm1, %v4776_v59 }
  0x58   : > { %4141 = vmatmul.mubr.msk.bf16.vlgmr.msra.gmra.mrb[0].mxu0 %vm335_vm1, %v4778_v60  ;;  %4008 = vmatprep.mubr.msk.bf16.mxu1 %vm335_vm1, %v4780_v61 }
  0x59   : > { %4173 = vmatpush3.bf16.msra.mxu0 %v2198_v5  ;;  %4144 = vmatprep.mubr.msk.bf16.mxu0 %vm335_vm1, %v4785_v1  ;;  %v3601_v5 = vld [vmem:[%s4675_s25 + $0xf2] sm:$0xff] }
  0x5a   : > { %4037 = vmatpush3.bf16.msra.mxu1 %v892_v10  ;;  %4571 = vmatprep.subr.msk.bf16.mxu0 %vm384_vm0, %v4801_v11  ;;  %v3603_v10 = vld [vmem:[%s4675_s25 + $0x10a] sm:$0xff]  ;;  %v1790_v14 = vmax.f32 %v3601_v5, 0.0  ;;  %v3612_v5 = vld [vmem:[%s4675_s25 + $0x172] sm:$0xff] }
  0x5b   : > { %4567 = vmatprep.subr.msk.bf16.mxu1 %vm384_vm0, %v4810_v35  ;;  %v1792_v21 = vmax.f32 %v3603_v10, 0.0  ;;  %v1799_v10 = vmax.f32 %v3610_v58, 0.0  ;;  %v3684_v58 = vld [vmem:[%s4675_s25 + $0x51] sm:$0xff] }
  0x5c   : > { %v4892_v25 = vpack.c.bf16 %v1791_v15, %v1790_v14  ;;  %v1801_v14 = vmax.f32 %v3612_v5, 0.0  ;;  %v4938_v15 = vpack.c.bf16 %v231_v8, %v230_v7  ;;  %v2428_v5 = vmax.f32 %v3684_v58, 0.0  ;;  %v3704_v58 = vld [vmem:[%s4675_s25 + $0x141] sm:$0xff] }
  0x5d   : > { %v4899_v30 = vpack.c.bf16 %v1793_v22, %v1792_v21  ;;  %v4940_v16 = vpack.c.bf16 %v1799_v10, %v1798_v9  ;;  %v202_v21 = vld [vmem:[%s4675_s25 + $0x168] sm:$0xff]  ;;  %v203_v22 = vld [vmem:[%s4675_s25 + $0x170] sm:$0xff]  ;;  %v2429_v7 = vmax.f32 %v3685_v62, 0.0  ;;  %v2430_v8 = vmax.f32 %v3686_v3, 0.0  ;;  %v3706_v62 = vld [vmem:[%s4675_s25 + $0x159] sm:$0xff] }
  0x5e   : > { %v4947_v28 = vpack.c.bf16 %v1801_v14, %v1800_v13  ;;  %v234_v34 = vmax.f32 %v202_v21, 0.0  ;;  %v235_v36 = vmax.f32 %v203_v22, 0.0  ;;  %v2458_v9 = vpack.c.bf16 %v2428_v5, %v2427_v4  ;;  %v3689_v14 = vld [vmem:[%s4675_s25 + $0x91] sm:$0xff]  ;;  %v3690_v21 = vld [vmem:[%s4675_s25 + $0x99] sm:$0xff] }
  0x5f   : > { %4009 = vmatmul.mubr.msk.bf16.gmra.mrb[4].mxu1 %vm335_vm1, %v4816_v17  ;;  %v2459_v10 = vpack.c.bf16 %v2430_v8, %v2429_v7  ;;  %v2850_v13 = vsel %vm384_vm0, %v3762_v54, 0  ;;  %v2432_v22 = vmax.f32 %v3688_v12, 0.0  ;;  %v2433_v27 = vmax.f32 %v3689_v14, 0.0 }
  0x60   : > { %4145 = vmatmul.mubr.msk.bf16.gmra.mrb[4].mxu0 %vm335_vm1, %v4820_v18  ;;  %4012 = vmatprep.mubr.msk.bf16.mxu1 %vm335_vm1, %v4822_v19  ;;  %v4960_v44 = vpack.c.bf16 %v235_v36, %v234_v34  ;;  %v2434_v29 = vmax.f32 %v3690_v21, 0.0  ;;  %v3691_v34 = vld [vmem:[%s4675_s25 + $0xa9] sm:$0xff]  ;;  %v3692_v36 = vld [vmem:[%s4675_s25 + $0xb1] sm:$0xff]  ;;  %v2448_v3 = vmax.f32 %v3704_v58, 0.0  ;;  %v2450_v5 = vmax.f32 %v3706_v62, 0.0  ;;  %v3747_v62 = vld [vmem:[%s4675_s25 + $0xfa] sm:$0xff] }
  0x61   : > { %4148 = vmatprep.mubr.msk.bf16.mxu0 %vm335_vm1, %v4827_v23  ;;  %v2436_v38 = vmax.f32 %v3692_v36, 0.0  ;;  %v3745_v58 = vld [vmem:[%s4675_s25 + $0xe2] sm:$0xff] }
  0x62   : > { %v2461_v33 = vpack.c.bf16 %v2434_v29, %v2433_v27  ;;  %v3712_v27 = vld [vmem:[%s4675_s25 + $0x1a1] sm:$0xff] }
  0x63   : > { %v3731_v29 = vld [vmem:[%s4675_s25 + $0x3a] sm:$0xff] }
  0x67   : > { %4013 = vmatmul.mubr.msk.bf16.gmra.mrb[8].mxu1 %vm335_vm1, %v4842_v39 }
  0x68   : > { %4149 = vmatmul.mubr.msk.bf16.gmra.mrb[8].mxu0 %vm335_vm1, %v4844_v40  ;;  %4016 = vmatprep.mubr.msk.bf16.mxu1 %vm335_vm1, %v4846_v41 }
  0x69   : > { %4152 = vmatprep.mubr.msk.bf16.mxu0 %vm335_vm1, %v4851_v46 }
  0x6f   : > { %4017 = vmatmul.mubr.msk.bf16.gmra.mrb[12].mxu1 %vm335_vm1, %v4866_v63 }
  0x70   : > { %4153 = vmatmul.mubr.msk.bf16.gmra.mrb[12].mxu0 %vm335_vm1, %v4868_v0  ;;  %4020 = vmatprep.mubr.msk.bf16.mxu1 %vm335_vm1, %v4870_v2 }
  0x71   : > { %4156 = vmatprep.mubr.msk.bf16.mxu0 %vm335_vm1, %v4875_v6 }
  0x77   : > { %4021 = vmatmul.mubr.msk.bf16.gmra.mrb[16].mxu1 %vm335_vm1, %v4890_v24 }
  0x78   : > { %4157 = vmatmul.mubr.msk.bf16.gmra.mrb[16].mxu0 %vm335_vm1, %v4892_v25  ;;  %4024 = vmatprep.mubr.msk.bf16.mxu1 %vm335_vm1, %v4894_v26 }
  0x79   : > { %4160 = vmatprep.mubr.msk.bf16.mxu0 %vm335_vm1, %v4899_v30 }
  0x7f   : > { %4025 = vmatmul.mubr.msk.bf16.gmra.mrb[20].mxu1 %vm335_vm1, %v4914_v51 }
  0x80   : > { %4161 = vmatmul.mubr.msk.bf16.gmra.mrb[20].mxu0 %vm335_vm1, %v4916_v52  ;;  %4028 = vmatprep.mubr.msk.bf16.mxu1 %vm335_vm1, %v4918_v53 }
  0x81   : > { %4164 = vmatprep.mubr.msk.bf16.mxu0 %vm335_vm1, %v4923_v57 }
  0x87   : > { %4029 = vmatmul.mubr.msk.bf16.gmra.mrb[24].mxu1 %vm335_vm1, %v4938_v15 }
  0x88   : > { %4165 = vmatmul.mubr.msk.bf16.gmra.mrb[24].mxu0 %vm335_vm1, %v4940_v16  ;;  %4032 = vmatprep.mubr.msk.bf16.mxu1 %vm335_vm1, %v4942_v20 }
  0x89   : > { %4168 = vmatprep.mubr.msk.bf16.mxu0 %vm335_vm1, %v4947_v28 }
  0x8f   : > { %4033 = vmatmul.mubr.msk.bf16.gmra.mrb[28].mxu1 %vm335_vm1, %v4960_v44 }
  0x90   : > { %4169 = vmatmul.mubr.msk.bf16.gmra.mrb[28].mxu0 %vm335_vm1, %v4962_v47  ;;  %4038 = vmatprep.mubr.msk.bf16.mxu1 %vm335_vm1, %v825_v48 }
  0x91   : > { %4174 = vmatprep.mubr.msk.bf16.mxu0 %vm335_vm1, %v4780_v61 }
  0x97   : > { %4039 = vmatmul.mubr.msk.bf16.vlgmr.msra.gmra.mrb[0].mxu1 %vm335_vm1, %v4764_v45  ;;  %v3660_v45 = vld [vmem:[%s4675_s25 + $0x180] sm:$0xff] }
  0x98   : > { %4175 = vmatmul.mubr.msk.bf16.vlgmr.msra.gmra.mrb[0].mxu0 %vm335_vm1, %v4816_v17  ;;  %4042 = vmatprep.mubr.msk.bf16.mxu1 %vm335_vm1, %v4778_v60  ;;  %v3661_v60 = vld [vmem:[%s4675_s25 + $0x188] sm:$0xff] }
  0x99   : > { %4207 = vmatpush3.bf16.msra.mxu0 %v2524_v49  ;;  %4178 = vmatprep.mubr.msk.bf16.mxu0 %vm335_vm1, %v4822_v19  ;;  %v2128_v11 = vmax.f32 %v3661_v60, 0.0 }
  0x9a   : > { %4071 = vmatpush3.bf16.msra.mxu1 %v1219_v50  ;;  %4572 = vmatprep.subr.msk.bf16.mxu0 %vm384_vm0, %v3762_v54  ;;  %v3695_v50 = vld [vmem:[%s4675_s25 + $0xd9] sm:$0xff]  ;;  %v3696_v54 = vld [vmem:[%s4675_s25 + $0xe1] sm:$0xff] }
  0x9b   : > { %v2440_v60 = vmax.f32 %v3696_v54, 0.0  ;;  %v3736_v54 = vld [vmem:[%s4675_s25 + $0x7a] sm:$0xff] }
  0x9f   : > { %4043 = vmatmul.mubr.msk.bf16.gmra.mrb[4].mxu1 %vm335_vm1, %v4785_v1  ;;  %v2127_v1 = vmax.f32 %v3660_v45, 0.0  ;;  %v3698_v45 = vld [vmem:[%s4675_s25 + $0xf9] sm:$0xff] }
  0xa0   : > { %4179 = vmatmul.mubr.msk.bf16.gmra.mrb[4].mxu0 %vm335_vm1, %v4842_v39  ;;  %4046 = vmatprep.mubr.msk.bf16.mxu1 %vm335_vm1, %v4820_v18  ;;  %v3662_v18 = vld [vmem:[%s4675_s25 + $0x198] sm:$0xff] }
  0xa1   : > { %4182 = vmatprep.mubr.msk.bf16.mxu0 %vm335_vm1, %v4846_v41  ;;  %v5029_v35 = vpack.c.bf16 %v2128_v11, %v2127_v1  ;;  %v2442_v11 = vmax.f32 %v3698_v45, 0.0  ;;  %v3738_v45 = vld [vmem:[%s4675_s25 + $0x92] sm:$0xff] }
  0xa7   : > { %4047 = vmatmul.mubr.msk.bf16.gmra.mrb[8].mxu1 %vm335_vm1, %v4827_v23  ;;  %v3663_v23 = vld [vmem:[%s4675_s25 + $0x1a0] sm:$0xff] }
  0xa8   : > { %4183 = vmatmul.mubr.msk.bf16.gmra.mrb[8].mxu0 %vm335_vm1, %v4866_v63  ;;  %4050 = vmatprep.mubr.msk.bf16.mxu1 %vm335_vm1, %v4844_v40  ;;  %v3681_v40 = vld [vmem:[%s4675_s25 + $0x31] sm:$0xff] }
  0xa9   : > { %4186 = vmatprep.mubr.msk.bf16.mxu0 %vm335_vm1, %v4870_v2 }
  0xaf   : > { %4051 = vmatmul.mubr.msk.bf16.gmra.mrb[12].mxu1 %vm335_vm1, %v4851_v46  ;;  %v3682_v46 = vld [vmem:[%s4675_s25 + $0x39] sm:$0xff] }
  0xb0   : > { %4187 = vmatmul.mubr.msk.bf16.gmra.mrb[12].mxu0 %vm335_vm1, %v4890_v24  ;;  %4054 = vmatprep.mubr.msk.bf16.mxu1 %vm335_vm1, %v4868_v0  ;;  %v2129_v0 = vmax.f32 %v3662_v18, 0.0 }
  0xb1   : > { %4190 = vmatprep.mubr.msk.bf16.mxu0 %vm335_vm1, %v4894_v26 }
  0xb7   : > { %4055 = vmatmul.mubr.msk.bf16.gmra.mrb[16].mxu1 %vm335_vm1, %v4875_v6  ;;  %v2130_v6 = vmax.f32 %v3663_v23, 0.0 }
  0xb8   : > { %4191 = vmatmul.mubr.msk.bf16.gmra.mrb[16].mxu0 %vm335_vm1, %v4914_v51  ;;  %4058 = vmatprep.mubr.msk.bf16.mxu1 %vm335_vm1, %v4892_v25  ;;  %v2425_v25 = vmax.f32 %v3681_v40, 0.0  ;;  %v3699_v40 = vld [vmem:[%s4675_s25 + $0x109] sm:$0xff] }
  0xb9   : > { %4194 = vmatprep.mubr.msk.bf16.mxu0 %vm335_vm1, %v4918_v53 }
  0xbf   : > { %4059 = vmatmul.mubr.msk.bf16.gmra.mrb[20].mxu1 %vm335_vm1, %v4899_v30  ;;  %v2426_v30 = vmax.f32 %v3682_v46, 0.0  ;;  %v3700_v46 = vld [vmem:[%s4675_s25 + $0x111] sm:$0xff] }
  0xc0   : > { %4195 = vmatmul.mubr.msk.bf16.gmra.mrb[20].mxu0 %vm335_vm1, %v4938_v15  ;;  %4062 = vmatprep.mubr.msk.bf16.mxu1 %vm335_vm1, %v4916_v52  ;;  %v2146_v52 = vpack.c.bf16 %v2130_v6, %v2129_v0  ;;  %v3702_v0 = vld [vmem:[%s4675_s25 + $0x129] sm:$0xff]  ;;  %v2444_v6 = vmax.f32 %v3700_v46, 0.0  ;;  %v3741_v46 = vld [vmem:[%s4675_s25 + $0xb2] sm:$0xff] }
  0xc1   : > { %4198 = vmatprep.mubr.msk.bf16.mxu0 %vm335_vm1, %v4942_v20  ;;  %v2457_v55 = vpack.c.bf16 %v2426_v30, %v2425_v25  ;;  %v2446_v30 = vmax.f32 %v3702_v0, 0.0  ;;  %v3743_v0 = vld [vmem:[%s4675_s25 + $0xca] sm:$0xff] }
  0xc7   : > { %4063 = vmatmul.mubr.msk.bf16.gmra.mrb[24].mxu1 %vm335_vm1, %v4923_v57 }
  0xc8   : > { %4199 = vmatmul.mubr.msk.bf16.gmra.mrb[24].mxu0 %vm335_vm1, %v4960_v44  ;;  %4066 = vmatprep.mubr.msk.bf16.mxu1 %vm335_vm1, %v4940_v16 }
  0xc9   : > { %4202 = vmatprep.mubr.msk.bf16.mxu0 %vm335_vm1, %v5029_v35 }
  0xcf   : > { %4067 = vmatmul.mubr.msk.bf16.gmra.mrb[28].mxu1 %vm335_vm1, %v4947_v28 }
  0xd0   : > { %4203 = vmatmul.mubr.msk.bf16.gmra.mrb[28].mxu0 %vm335_vm1, %v2146_v52  ;;  %4072 = vmatprep.mubr.msk.bf16.mxu1 %vm335_vm1, %v4776_v59  ;;  %v2431_v59 = vmax.f32 %v3687_v32, 0.0  ;;  %v3710_v32 = vld [vmem:[%s4675_s25 + $0x189] sm:$0xff] }
  0xd1   : > { %4208 = vmatprep.mubr.msk.bf16.mxu0 %vm335_vm1, %v2457_v55  ;;  %v2454_v14 = vmax.f32 %v3710_v32, 0.0  ;;  %v3751_v32 = vld [vmem:[%s4675_s25 + $0x12a] sm:$0xff] }
  0xd2   : > { %v2460_v31 = vpack.c.bf16 %v2432_v22, %v2431_v59  ;;  %v3711_v22 = vld [vmem:[%s4675_s25 + $0x199] sm:$0xff] }
  0xd7   : > { %4073 = vmatmul.mubr.msk.bf16.vlgmr.msra.gmra.mrb[0].mxu1 %vm335_vm1, %v4780_v61  ;;  %v3693_v61 = vld [vmem:[%s4675_s25 + $0xc1] sm:$0xff] }
  0xd8   : > { %4209 = vmatmul.mubr.msk.bf16.vlgmr.msra.gmra.mrb[0].mxu0 %vm335_vm1, %v2458_v9  ;;  %4076 = vmatprep.mubr.msk.bf16.mxu1 %vm335_vm1, %v4816_v17  ;;  %v2435_v17 = vmax.f32 %v3691_v34, 0.0  ;;  %v2437_v42 = vmax.f32 %v3693_v61, 0.0  ;;  %v3707_v9 = vld [vmem:[%s4675_s25 + $0x169] sm:$0xff]  ;;  %v2752_v34 = vmax.f32 %v3731_v29, 0.0 }
  0xd9   : > { %4241 = vmatpush3.bf16.msra.mxu0 %v2850_v13  ;;  %4212 = vmatprep.mubr.msk.bf16.mxu0 %vm335_vm1, %v2459_v10  ;;  %v3708_v10 = vld [vmem:[%s4675_s25 + $0x171] sm:$0xff]  ;;  %v3761_v29 = vld [vmem:[%s4675_s25 + $0x1a2] sm:$0xff] }
  0xda   : > { %v2462_v48 = vpack.c.bf16 %v2436_v38, %v2435_v17  ;;  %v2463_v49 = vpack.c.bf16 %v2438_v43, %v2437_v42  ;;  %v2452_v12 = vmax.f32 %v3708_v10, 0.0  ;;  %v3733_v17 = vld [vmem:[%s4675_s25 + $0x52] sm:$0xff]  ;;  %v3735_v38 = vld [vmem:[%s4675_s25 + $0x6a] sm:$0xff] }
  0xdb   : > { %v2754_v42 = vmax.f32 %v3733_v17, 0.0  ;;  %v3749_v10 = vld [vmem:[%s4675_s25 + $0x112] sm:$0xff] }
  0xdf   : > { %4077 = vmatmul.mubr.msk.bf16.gmra.mrb[4].mxu1 %vm335_vm1, %v4822_v19  ;;  %v3697_v19 = vld [vmem:[%s4675_s25 + $0xf1] sm:$0xff] }
  0xe0   : > { %4213 = vmatmul.mubr.msk.bf16.gmra.mrb[4].mxu0 %vm335_vm1, %v2460_v31  ;;  %4080 = vmatprep.mubr.msk.bf16.mxu1 %vm335_vm1, %v4842_v39  ;;  %v2439_v39 = vmax.f32 %v3695_v50, 0.0  ;;  %v2441_v1 = vmax.f32 %v3697_v19, 0.0  ;;  %v2456_v31 = vmax.f32 %v3712_v27, 0.0  ;;  %v3737_v19 = vld [vmem:[%s4675_s25 + $0x82] sm:$0xff] }
  0xe1   : > { %4216 = vmatprep.mubr.msk.bf16.mxu0 %vm335_vm1, %v2461_v33 }
  0xe2   : > { %v2464_v18 = vpack.c.bf16 %v2440_v60, %v2439_v39  ;;  %v2465_v23 = vpack.c.bf16 %v2442_v11, %v2441_v1  ;;  %v3739_v39 = vld [vmem:[%s4675_s25 + $0x9a] sm:$0xff]  ;;  %v2758_v60 = vmax.f32 %v3737_v19, 0.0  ;;  %v2759_v1 = vmax.f32 %v3738_v45, 0.0 }
  0xe3   : > { %v2760_v11 = vmax.f32 %v3739_v39, 0.0 }
  0xe7   : > { %4081 = vmatmul.mubr.msk.bf16.gmra.mrb[8].mxu1 %vm335_vm1, %v4846_v41  ;;  %v3701_v41 = vld [vmem:[%s4675_s25 + $0x121] sm:$0xff] }
  0xe8   : > { %4217 = vmatmul.mubr.msk.bf16.gmra.mrb[8].mxu0 %vm335_vm1, %v2462_v48  ;;  %4084 = vmatprep.mubr.msk.bf16.mxu1 %vm335_vm1, %v4866_v63  ;;  %v2443_v63 = vmax.f32 %v3699_v40, 0.0  ;;  %v2445_v25 = vmax.f32 %v3701_v41, 0.0  ;;  %v2756_v48 = vmax.f32 %v3735_v38, 0.0  ;;  %v3740_v40 = vld [vmem:[%s4675_s25 + $0xaa] sm:$0xff]  ;;  %v3742_v41 = vld [vmem:[%s4675_s25 + $0xc2] sm:$0xff] }
  0xe9   : > { %4220 = vmatprep.mubr.msk.bf16.mxu0 %vm335_vm1, %v2463_v49 }
  0xea   : > { %v2466_v52 = vpack.c.bf16 %v2444_v6, %v2443_v63  ;;  %v2467_v55 = vpack.c.bf16 %v2446_v30, %v2445_v25  ;;  %v2761_v63 = vmax.f32 %v3740_v40, 0.0  ;;  %v2762_v6 = vmax.f32 %v3741_v46, 0.0 }
  0xeb   : > { %v2763_v25 = vmax.f32 %v3742_v41, 0.0  ;;  %v2764_v30 = vmax.f32 %v3743_v0, 0.0 }
  0xef   : > { %4085 = vmatmul.mubr.msk.bf16.gmra.mrb[12].mxu1 %vm335_vm1, %v4870_v2  ;;  %v3705_v2 = vld [vmem:[%s4675_s25 + $0x151] sm:$0xff] }
  0xf0   : > { %4221 = vmatmul.mubr.msk.bf16.gmra.mrb[12].mxu0 %vm335_vm1, %v2464_v18  ;;  %4088 = vmatprep.mubr.msk.bf16.mxu1 %vm335_vm1, %v4890_v24  ;;  %v2447_v24 = vmax.f32 %v3703_v56, 0.0  ;;  %v2449_v4 = vmax.f32 %v3705_v2, 0.0  ;;  %v3744_v56 = vld [vmem:[%s4675_s25 + $0xda] sm:$0xff]  ;;  %v3746_v2 = vld [vmem:[%s4675_s25 + $0xf2] sm:$0xff] }
  0xf1   : > { %4224 = vmatprep.mubr.msk.bf16.mxu0 %vm335_vm1, %v2465_v23  ;;  %v2787_v23 = vpack.c.bf16 %v2760_v11, %v2759_v1 }
  0xf2   : > { %v2468_v7 = vpack.c.bf16 %v2448_v3, %v2447_v24  ;;  %v2469_v8 = vpack.c.bf16 %v2450_v5, %v2449_v4  ;;  %v2765_v24 = vmax.f32 %v3744_v56, 0.0  ;;  %v2766_v3 = vmax.f32 %v3745_v58, 0.0 }
  0xf3   : > { %v2767_v4 = vmax.f32 %v3746_v2, 0.0  ;;  %v2768_v5 = vmax.f32 %v3747_v62, 0.0 }
  0xf7   : > { %4089 = vmatmul.mubr.msk.bf16.gmra.mrb[16].mxu1 %vm335_vm1, %v4894_v26  ;;  %v3709_v26 = vld [vmem:[%s4675_s25 + $0x181] sm:$0xff] }
  0xf8   : > { %4225 = vmatmul.mubr.msk.bf16.gmra.mrb[16].mxu0 %vm335_vm1, %v2466_v52  ;;  %4092 = vmatprep.mubr.msk.bf16.mxu1 %vm335_vm1, %v4914_v51  ;;  %v2451_v51 = vmax.f32 %v3707_v9, 0.0  ;;  %v2453_v13 = vmax.f32 %v3709_v26, 0.0  ;;  %v2788_v52 = vpack.c.bf16 %v2762_v6, %v2761_v63  ;;  %v3748_v9 = vld [vmem:[%s4675_s25 + $0x10a] sm:$0xff]  ;;  %v3750_v26 = vld [vmem:[%s4675_s25 + $0x122] sm:$0xff] }
  0xf9   : > { %4228 = vmatprep.mubr.msk.bf16.mxu0 %vm335_vm1, %v2467_v55  ;;  %v2789_v55 = vpack.c.bf16 %v2764_v30, %v2763_v25 }
  0xfa   : > { %v2470_v21 = vpack.c.bf16 %v2452_v12, %v2451_v51  ;;  %v2471_v59 = vpack.c.bf16 %v2454_v14, %v2453_v13  ;;  %v2769_v51 = vmax.f32 %v3748_v9, 0.0  ;;  %v2770_v12 = vmax.f32 %v3749_v10, 0.0 }
  0xfb   : > { %v2771_v13 = vmax.f32 %v3750_v26, 0.0  ;;  %v2772_v14 = vmax.f32 %v3751_v32, 0.0 }
  0xff   : > { %4093 = vmatmul.mubr.msk.bf16.gmra.mrb[20].mxu1 %vm335_vm1, %v4918_v53  ;;  %v3730_v53 = vld [vmem:[%s4675_s25 + $0x32] sm:$0xff] }
 0x100   : > { %4229 = vmatmul.mubr.msk.bf16.gmra.mrb[20].mxu0 %vm335_vm1, %v2468_v7  ;;  %4096 = vmatprep.mubr.msk.bf16.mxu1 %vm335_vm1, %v4938_v15  ;;  %v2455_v15 = vmax.f32 %v3711_v22, 0.0  ;;  %v2751_v33 = vmax.f32 %v3730_v53, 0.0  ;;  %v2790_v7 = vpack.c.bf16 %v2766_v3, %v2765_v24  ;;  %v2793_v22 = vpack.c.bf16 %v2772_v14, %v2771_v13  ;;  %v3760_v53 = vld [vmem:[%s4675_s25 + $0x19a] sm:$0xff] }
 0x101   : > { %4232 = vmatprep.mubr.msk.bf16.mxu0 %vm335_vm1, %v2469_v8  ;;  %v2791_v8 = vpack.c.bf16 %v2768_v5, %v2767_v4 }
 0x102   : > { %v2472_v36 = vpack.c.bf16 %v2456_v31, %v2455_v15  ;;  %v2783_v61 = vpack.c.bf16 %v2752_v34, %v2751_v33  ;;  %v2781_v15 = vmax.f32 %v3760_v53, 0.0  ;;  %v2782_v31 = vmax.f32 %v3761_v29, 0.0 }
 0x104   : > { %v2798_v33 = vpack.c.bf16 %v2782_v31, %v2781_v15 }
 0x107   : > { %4097 = vmatmul.mubr.msk.bf16.gmra.mrb[24].mxu1 %vm335_vm1, %v4942_v20  ;;  %v3734_v20 = vld [vmem:[%s4675_s25 + $0x62] sm:$0xff] }
 0x108   : > { %4233 = vmatmul.mubr.msk.bf16.gmra.mrb[24].mxu0 %vm335_vm1, %v2470_v21  ;;  %4100 = vmatprep.mubr.msk.bf16.mxu1 %vm335_vm1, %v4960_v44  ;;  %v2753_v44 = vmax.f32 %v3732_v37, 0.0  ;;  %v2755_v43 = vmax.f32 %v3734_v20, 0.0  ;;  %v2792_v21 = vpack.c.bf16 %v2770_v12, %v2769_v51 }
 0x109   : > { %4236 = vmatprep.mubr.msk.bf16.mxu0 %vm335_vm1, %v2471_v59  ;;  %v3093_v59 = vld [vmem:[%s5355_s2] sm:$0x3] }
 0x10a   : > { %v2784_v49 = vpack.c.bf16 %v2754_v42, %v2753_v44  ;;  %v2785_v50 = vpack.c.bf16 %v2756_v48, %v2755_v43  ;;  %4573 = vmatprep.subr.msk.bf16.mxu1 %vm3143_vm2, %v3093_v59  ;;  %v3145_v27 = vsel %vm3143_vm2, %v3093_v59, 0 }
 0x10b   : > { %4275 = vmatpush3.bf16.msra.mxu1 %v3145_v27 }
 0x10f   : > { %4101 = vmatmul.mubr.msk.bf16.gmra.mrb[28].mxu1 %vm335_vm1, %v5029_v35  ;;  %v2757_v35 = vmax.f32 %v3736_v54, 0.0 }
 0x110   : > { %4237 = vmatmul.mubr.msk.bf16.gmra.mrb[28].mxu0 %vm335_vm1, %v2472_v36 }
 0x111   : > { %4242 = vmatprep.mubr.msk.bf16.mxu0 %vm335_vm1, %v2783_v61  ;;  %v2786_v18 = vpack.c.bf16 %v2758_v60, %v2757_v35 }
 0x118   : > { %4243 = vmatmul.mubr.msk.bf16.vlgmr.msra.gmra.mrb[0].mxu0 %vm335_vm1, %v2784_v49 }
 0x119   : > { %4246 = vmatprep.mubr.msk.bf16.mxu0 %vm335_vm1, %v2785_v50 }
 0x120   : > { %4247 = vmatmul.mubr.msk.bf16.gmra.mrb[4].mxu0 %vm335_vm1, %v2786_v18 }
 0x121   : > { %4250 = vmatprep.mubr.msk.bf16.mxu0 %vm335_vm1, %v2787_v23 }
 0x128   : > { %4251 = vmatmul.mubr.msk.bf16.gmra.mrb[8].mxu0 %vm335_vm1, %v2788_v52 }
 0x129   : > { %4254 = vmatprep.mubr.msk.bf16.mxu0 %vm335_vm1, %v2789_v55 }
 0x130   : > { %4255 = vmatmul.mubr.msk.bf16.gmra.mrb[12].mxu0 %vm335_vm1, %v2790_v7 }
 0x131   : > { %4258 = vmatprep.mubr.msk.bf16.mxu0 %vm335_vm1, %v2791_v8 }
 0x138   : > { %4259 = vmatmul.mubr.msk.bf16.gmra.mrb[16].mxu0 %vm335_vm1, %v2792_v21 }
 0x139   : > { %4262 = vmatprep.mubr.msk.bf16.mxu0 %vm335_vm1, %v2793_v22 }
 0x140   : > { %4263 = vmatmul.mubr.msk.bf16.gmra.mrb[20].mxu0 %vm335_vm1, %v4923_v57 }
 0x141   : > { %4266 = vmatprep.mubr.msk.bf16.mxu0 %vm335_vm1, %v4940_v16 }
 0x148   : > { %4267 = vmatmul.mubr.msk.bf16.gmra.mrb[24].mxu0 %vm335_vm1, %v4947_v28 }
 0x149   : > { %4270 = vmatprep.mubr.msk.bf16.mxu0 %vm335_vm1, %v4962_v47 }
 0x150   : > { %4271 = vmatmul.mubr.msk.bf16.gmra.mrb[28].mxu0 %vm335_vm1, %v2798_v33 }
 0x1aa   : > { %v4074_v34 = vpop.f32.mrb[0].mxu1 }
 0x1ab   : > { %v1255_v36 = vpop.f32.mrb[1].mxu1 }
 0x1ac   : > { %v4075_v61 = vpop.f32.mrb[2].mxu1 }
 0x1ad   : > { %v1258_v57 = vpop.f32.mrb[3].mxu1 }
 0x1b2   : > { %v4078_v37 = vpop.f32.mrb[4].mxu1 }
 0x1b3   : > { %v1271_v17 = vpop.f32.mrb[5].mxu1 }
 0x1b4   : > { %v4079_v16 = vpop.f32.mrb[6].mxu1 }
 0x1b5   : > { %v1274_v20 = vpop.f32.mrb[7].mxu1 }
 0x1ba   : > { %v4082_v38 = vpop.f32.mrb[8].mxu1 }
 0x1bb   : > { %v1287_v44 = vpop.f32.mrb[9].mxu1 }
 0x1bc   : > { %v4083_v42 = vpop.f32.mrb[10].mxu1 }
 0x1bd   : > { %v1290_v28 = vpop.f32.mrb[11].mxu1 }
 0x1c2   : > { %v5172_v43 = vpop.f32.mrb[12].mxu1 }
 0x1c3   : > { %v5174_v48 = vpop.f32.mrb[13].mxu1 }
 0x1c4   : > { %v5176_v47 = vpop.f32.mrb[14].mxu1 }
 0x1c5   : > { %v5178_v49 = vpop.f32.mrb[15].mxu1 }
 0x1ca   : > { %v5180_v50 = vpop.f32.mrb[16].mxu1 }
 0x1cb   : > { %v5182_v54 = vpop.f32.mrb[17].mxu1 }
 0x1cc   : > { %v5184_v19 = vpop.f32.mrb[18].mxu1 }
 0x1cd   : > { %v5186_v45 = vpop.f32.mrb[19].mxu1 }
 0x1d2   : > { %v5188_v39 = vpop.f32.mrb[20].mxu1 }
 0x1d3   : > { %v5190_v35 = vpop.f32.mrb[21].mxu1 }
 0x1d4   : > { %v5192_v60 = vpop.f32.mrb[22].mxu1 }
 0x1d5   : > { %v5194_v1 = vpop.f32.mrb[23].mxu1 }
 0x1da   : > { %v5196_v11 = vpop.f32.mrb[24].mxu1 }
 0x1db   : > { %v5198_v18 = vpop.f32.mrb[25].mxu1 }
 0x1dc   : > { %v5200_v23 = vpop.f32.mrb[26].mxu1 }
 0x1dd   : > { %v5202_v40 = vpop.f32.mrb[27].mxu1 }
 0x1e2   : > { %v5204_v46 = vpop.f32.mrb[28].mxu1 }
 0x1e3   : > { %v5206_v41 = vpop.f32.mrb[29].mxu1 }
 0x1e4   : > { %v5208_v0 = vpop.f32.mrb[30].mxu1 }
 0x1e5   : > { %v5210_v63 = vpop.f32.mrb[31].mxu1 }
 0x1eb   : > { %v4244_v6 = vpop.f32.mrb[0].mxu0 }
 0x1ec   : > { %v4308_v25 = vadd.f32 %v4244_v6, %v4074_v34  ;;  %v2886_v30 = vpop.f32.mrb[1].mxu0 }
 0x1ed   : > { %v4309_v52 = vadd.f32 %v2886_v30, %v1255_v36  ;;  %v4245_v55 = vpop.f32.mrb[2].mxu0 }
 0x1ee   : > { %v4310_v56 = vadd.f32 %v4245_v55, %v4075_v61  ;;  %v2889_v58 = vpop.f32.mrb[3].mxu0  ;;  %v3047_v62 = vmax.f32 %v4308_v25, 0.0 }
 0x1ef   : > { %v4311_v2 = vadd.f32 %v2889_v58, %v1258_v57  ;;  %v3045_v3 = vmax.f32 %v4309_v52, 0.0 }
 0x1f0   : > { %v3048_v24 = vmax.f32 %v4310_v56, 0.0 }
 0x1f1   : > { %v3046_v4 = vmax.f32 %v4311_v2, 0.0 }
 0x1f2   : > { %v3078_v5 = vpack.c.bf16 %v3048_v24, %v3047_v62 }
 0x1f3   : > { %v3077_v7 = vpack.c.bf16 %v3046_v4, %v3045_v3  ;;  %v4248_v8 = vpop.f32.mrb[4].mxu0 }
 0x1f4   : > { %v4312_v9 = vadd.f32 %v4248_v8, %v4078_v37  ;;  %v2902_v10 = vpop.f32.mrb[5].mxu0 }
 0x1f5   : > { %v4313_v26 = vadd.f32 %v2902_v10, %v1271_v17  ;;  %v4249_v32 = vpop.f32.mrb[6].mxu0  ;;  %4276 = vmatprep.mubr.msk.bf16.mxu1 %vm3094_vm3, %v3077_v7 }
 0x1f6   : > { %v4314_v51 = vadd.f32 %v4249_v32, %v4079_v16  ;;  %v2905_v12 = vpop.f32.mrb[7].mxu0  ;;  %4277 = vmatmul.mubr.msk.bf16.vlgmr.msra.gmra.mrb[32].mxu1 %vm3094_vm3, %v3078_v5  ;;  %v3051_v14 = vmax.f32 %v4312_v9, 0.0 }
 0x1f7   : > { %v4315_v13 = vadd.f32 %v2905_v12, %v1274_v20  ;;  %v3049_v59 = vmax.f32 %v4313_v26, 0.0 }
 0x1f8   : > { %v3052_v21 = vmax.f32 %v4314_v51, 0.0 }
 0x1f9   : > { %v3050_v22 = vmax.f32 %v4315_v13, 0.0 }
 0x1fa   : > { %v3080_v27 = vpack.c.bf16 %v3052_v21, %v3051_v14 }
 0x1fb   : > { %v3079_v53 = vpack.c.bf16 %v3050_v22, %v3049_v59  ;;  %v4252_v29 = vpop.f32.mrb[8].mxu0 }
 0x1fc   : > { %v4316_v15 = vadd.f32 %v4252_v29, %v4082_v38  ;;  %v2918_v31 = vpop.f32.mrb[9].mxu0 }
 0x1fd   : > { %v4317_v33 = vadd.f32 %v2918_v31, %v1287_v44  ;;  %v4253_v34 = vpop.f32.mrb[10].mxu0  ;;  %4280 = vmatprep.mubr.msk.bf16.mxu1 %vm3094_vm3, %v3079_v53 }
 0x1fe   : > { %v4318_v36 = vadd.f32 %v4253_v34, %v4083_v42  ;;  %v2921_v61 = vpop.f32.mrb[11].mxu0  ;;  %4281 = vmatmul.mubr.msk.bf16.gmra.mrb[36].mxu1 %vm3094_vm3, %v3080_v27  ;;  %v3055_v37 = vmax.f32 %v4316_v15, 0.0 }
 0x1ff   : > { %v4319_v57 = vadd.f32 %v2921_v61, %v1290_v28  ;;  %v3053_v16 = vmax.f32 %v4317_v33, 0.0 }
 0x200   : > { %v3056_v17 = vmax.f32 %v4318_v36, 0.0 }
 0x201   : > { %v3054_v20 = vmax.f32 %v4319_v57, 0.0 }
 0x202   : > { %v3082_v6 = vpack.c.bf16 %v3056_v17, %v3055_v37 }
 0x203   : > { %v3081_v25 = vpack.c.bf16 %v3054_v20, %v3053_v16  ;;  %v4256_v30 = vpop.f32.mrb[12].mxu0 }
 0x204   : > { %v4320_v52 = vadd.f32 %v4256_v30, %v5172_v43  ;;  %v2934_v38 = vpop.f32.mrb[13].mxu0 }
 0x205   : > { %v4321_v44 = vadd.f32 %v2934_v38, %v5174_v48  ;;  %v4257_v55 = vpop.f32.mrb[14].mxu0  ;;  %4284 = vmatprep.mubr.msk.bf16.mxu1 %vm3094_vm3, %v3081_v25 }
 0x206   : > { %v4322_v42 = vadd.f32 %v4257_v55, %v5176_v47  ;;  %v2937_v56 = vpop.f32.mrb[15].mxu0  ;;  %4285 = vmatmul.mubr.msk.bf16.gmra.mrb[40].mxu1 %vm3094_vm3, %v3082_v6  ;;  %v3059_v58 = vmax.f32 %v4320_v52, 0.0 }
 0x207   : > { %v4323_v28 = vadd.f32 %v2937_v56, %v5178_v49  ;;  %v3057_v62 = vmax.f32 %v4321_v44, 0.0 }
 0x208   : > { %v3060_v2 = vmax.f32 %v4322_v42, 0.0 }
 0x209   : > { %v3058_v24 = vmax.f32 %v4323_v28, 0.0 }
 0x20a   : > { %v3084_v3 = vpack.c.bf16 %v3060_v2, %v3059_v58 }
 0x20b   : > { %v3083_v4 = vpack.c.bf16 %v3058_v24, %v3057_v62  ;;  %v4260_v43 = vpop.f32.mrb[16].mxu0  ;;  %v4584_v62 = vld [vmem:[%s4675_s25 + $0x19] sm:$0xff] }
 0x20c   : > { %v4324_v5 = vadd.f32 %v4260_v43, %v5180_v50  ;;  %v2950_v48 = vpop.f32.mrb[17].mxu0 }
 0x20d   : > { %v4325_v7 = vadd.f32 %v2950_v48, %v5182_v54  ;;  %v4261_v8 = vpop.f32.mrb[18].mxu0  ;;  %4288 = vmatprep.mubr.msk.bf16.mxu1 %vm3094_vm3, %v3083_v4  ;;  %v4585_v4 = vld [vmem:[%s4675_s25 + $0x39] sm:$0xff]  ;;  %v4586_v48 = vld [vmem:[%s4675_s25 + $0x21] sm:$0xff] }
 0x20e   : > { %v4326_v47 = vadd.f32 %v4261_v8, %v5184_v19  ;;  %v2953_v9 = vpop.f32.mrb[19].mxu0  ;;  %4289 = vmatmul.mubr.msk.bf16.gmra.mrb[44].mxu1 %vm3094_vm3, %v3084_v3  ;;  %v3063_v10 = vmax.f32 %v4324_v5, 0.0 }
 0x20f   : > { %v4327_v49 = vadd.f32 %v2953_v9, %v5186_v45  ;;  %v3061_v32 = vmax.f32 %v4325_v7, 0.0 }
 0x210   : > { %v3064_v26 = vmax.f32 %v4326_v47, 0.0  ;;  %v4587_v47 = vld [vmem:[%s4675_s25 + $0x61] sm:$0xff] }
 0x211   : > { %v3062_v51 = vmax.f32 %v4327_v49, 0.0 }
 0x212   : > { %v3086_v12 = vpack.c.bf16 %v3064_v26, %v3063_v10  ;;  %v4588_v10 = vld [vmem:[%s4675_s25 + $0x49] sm:$0xff] }
 0x213   : > { %v3085_v13 = vpack.c.bf16 %v3062_v51, %v3061_v32  ;;  %v4264_v50 = vpop.f32.mrb[20].mxu0  ;;  %v4589_v51 = vld [vmem:[%s4675_s25 + $0x69] sm:$0xff] }
 0x214   : > { %v4328_v14 = vadd.f32 %v4264_v50, %v5188_v39  ;;  %v2966_v54 = vpop.f32.mrb[21].mxu0  ;;  %v4590_v50 = vld [vmem:[%s4675_s25 + $0x51] sm:$0xff] }
 0x215   : > { %v4329_v21 = vadd.f32 %v2966_v54, %v5190_v35  ;;  %v4265_v59 = vpop.f32.mrb[22].mxu0  ;;  %4292 = vmatprep.mubr.msk.bf16.mxu1 %vm3094_vm3, %v3085_v13 }
 0x216   : > { %v4330_v19 = vadd.f32 %v4265_v59, %v5192_v60  ;;  %v2969_v22 = vpop.f32.mrb[23].mxu0  ;;  %4293 = vmatmul.mubr.msk.bf16.gmra.mrb[48].mxu1 %vm3094_vm3, %v3086_v12  ;;  %v3067_v27 = vmax.f32 %v4328_v14, 0.0 }
 0x217   : > { %v4331_v45 = vadd.f32 %v2969_v22, %v5194_v1  ;;  %v3065_v29 = vmax.f32 %v4329_v21, 0.0  ;;  %v4591_v21 = vld [vmem:[%s4675_s25 + $0x91] sm:$0xff]  ;;  %v4592_v22 = vld [vmem:[%s4675_s25 + $0x79] sm:$0xff] }
 0x218   : > { %v3068_v53 = vmax.f32 %v4330_v19, 0.0 }
 0x219   : > { %v3066_v15 = vmax.f32 %v4331_v45, 0.0 }
 0x21a   : > { %v3088_v31 = vpack.c.bf16 %v3068_v53, %v3067_v27  ;;  %v4593_v53 = vld [vmem:[%s4675_s25 + $0x99] sm:$0xff] }
 0x21b   : > { %v3087_v33 = vpack.c.bf16 %v3066_v15, %v3065_v29  ;;  %v4268_v39 = vpop.f32.mrb[24].mxu0 }
 0x21c   : > { %v4332_v34 = vadd.f32 %v4268_v39, %v5196_v11  ;;  %v2982_v35 = vpop.f32.mrb[25].mxu0 }
 0x21d   : > { %v4333_v36 = vadd.f32 %v2982_v35, %v5198_v18  ;;  %v4269_v61 = vpop.f32.mrb[26].mxu0  ;;  %4296 = vmatprep.mubr.msk.bf16.mxu1 %vm3094_vm3, %v3087_v33 }
 0x21e   : > { %v4334_v60 = vadd.f32 %v4269_v61, %v5200_v23  ;;  %v2985_v57 = vpop.f32.mrb[27].mxu0  ;;  %4297 = vmatmul.mubr.msk.bf16.gmra.mrb[52].mxu1 %vm3094_vm3, %v3088_v31  ;;  %v3071_v37 = vmax.f32 %v4332_v34, 0.0  ;;  %v4594_v31 = vld [vmem:[%s4675_s25 + $0x81] sm:$0xff]  ;;  %v4596_v61 = vld [vmem:[%s4675_s25 + $0xa9] sm:$0xff] }
 0x21f   : > { %v4335_v1 = vadd.f32 %v2985_v57, %v5202_v40  ;;  %v3069_v16 = vmax.f32 %v4333_v36, 0.0  ;;  %v4595_v34 = vld [vmem:[%s4675_s25 + $0xc1] sm:$0xff] }
 0x220   : > { %v3072_v17 = vmax.f32 %v4334_v60, 0.0 }
 0x221   : > { %v3070_v20 = vmax.f32 %v4335_v1, 0.0  ;;  %v4597_v1 = vld [vmem:[%s4675_s25 + $0xc9] sm:$0xff] }
 0x222   : > { %v3090_v6 = vpack.c.bf16 %v3072_v17, %v3071_v37 }
 0x223   : > { %v3089_v25 = vpack.c.bf16 %v3070_v20, %v3069_v16  ;;  %v4272_v11 = vpop.f32.mrb[28].mxu0  ;;  %v4598_v16 = vld [vmem:[%s4675_s25 + $0xb1] sm:$0xff] }
 0x224   : > { %v4336_v30 = vadd.f32 %v4272_v11, %v5204_v46  ;;  %v2998_v18 = vpop.f32.mrb[29].mxu0 }
 0x225   : > { %v4337_v52 = vadd.f32 %v2998_v18, %v5206_v41  ;;  %v4273_v38 = vpop.f32.mrb[30].mxu0  ;;  %4300 = vmatprep.mubr.msk.bf16.mxu1 %vm3094_vm3, %v3089_v25  ;;  %v4599_v25 = vld [vmem:[%s4675_s25 + $0xf1] sm:$0xff]  ;;  %v4600_v18 = vld [vmem:[%s4675_s25 + $0xd9] sm:$0xff] }
 0x226   : > { %v4338_v23 = vadd.f32 %v4273_v38, %v5208_v0  ;;  %v3001_v40 = vpop.f32.mrb[31].mxu0  ;;  %4301 = vmatmul.mubr.msk.bf16.gmra.mrb[56].mxu1 %vm3094_vm3, %v3090_v6  ;;  %v3075_v55 = vmax.f32 %v4336_v30, 0.0  ;;  %v4583_v0 = vld [vmem:[%s4675_s25 + $0x31] sm:$0xff] }
 0x227   : > { %v4339_v44 = vadd.f32 %v3001_v40, %v5210_v63  ;;  %v3073_v56 = vmax.f32 %v4337_v52, 0.0 }
 0x228   : > { %v3076_v42 = vmax.f32 %v4338_v23, 0.0  ;;  %v4601_v23 = vld [vmem:[%s4675_s25 + $0xf9] sm:$0xff] }
 0x229   : > { %v3074_v46 = vmax.f32 %v4339_v44, 0.0 }
 0x22a   : > { %v3092_v28 = vpack.c.bf16 %v3076_v42, %v3075_v55  ;;  %v4602_v55 = vld [vmem:[%s4675_s25 + $0xe1] sm:$0xff] }
 0x22b   : > { %v3091_v58 = vpack.c.bf16 %v3074_v46, %v3073_v56  ;;  %v4603_v46 = vld [vmem:[%s4675_s25 + $0x121] sm:$0xff] }
 0x22d   : > { %4304 = vmatprep.mubr.msk.bf16.mxu1 %vm3094_vm3, %v3091_v58 }
 0x22e   : > { %4305 = vmatmul.mubr.msk.bf16.gmra.mrb[60].mxu1 %vm3094_vm3, %v3092_v28 }
 0x2c9   : > { %v4278_v41 = vpop.f32.mrb[32].mxu1 }
 0x2ca   : > { %v3310_v63 = vadd.f32 %v4583_v0, %v4278_v41  ;;  %v3181_v2 = vpop.f32.mrb[33].mxu1  ;;  %v4604_v41 = vld [vmem:[%s4675_s25 + $0x109] sm:$0xff] }
 0x2cb   : > { %v3308_v24 = vadd.f32 %v4584_v62, %v3181_v2  ;;  %v4279_v3 = vpop.f32.mrb[34].mxu1  ;;  %v4605_v2 = vld [vmem:[%s4675_s25 + $0x129] sm:$0xff] }
 0x2cc   : > { %3342 = vst.msk [vmem:[%s5252_s16 + $0x10] sm:$0xff] %vm335_vm1, %v3310_v63  ;;  %v3311_v43 = vadd.f32 %v4585_v4, %v4279_v3  ;;  %v3184_v5 = vpop.f32.mrb[35].mxu1  ;;  %v4606_v3 = vld [vmem:[%s4675_s25 + $0x111] sm:$0xff] }
 0x2cd   : > { %3340 = vst.msk [vmem:[%s5252_s16] sm:$0xff] %vm335_vm1, %v3308_v24  ;;  %v3309_v7 = vadd.f32 %v4586_v48, %v3184_v5  ;;  %v4607_v5 = vld [vmem:[%s4675_s25 + $0x151] sm:$0xff] }
 0x2ce   : > { %3343 = vst.msk [vmem:[%s5252_s16 + $0x18] sm:$0xff] %vm335_vm1, %v3311_v43 }
 0x2cf   : > { %3341 = vst.msk [vmem:[%s5252_s16 + $0x8] sm:$0xff] %vm335_vm1, %v3309_v7 }
 0x2d1   : > { %v4282_v8 = vpop.f32.mrb[36].mxu1 }
 0x2d2   : > { %v3314_v9 = vadd.f32 %v4587_v47, %v4282_v8  ;;  %v3197_v49 = vpop.f32.mrb[37].mxu1  ;;  %v4608_v8 = vld [vmem:[%s4675_s25 + $0x139] sm:$0xff] }
 0x2d3   : > { %v3312_v26 = vadd.f32 %v4588_v10, %v3197_v49  ;;  %v4283_v32 = vpop.f32.mrb[38].mxu1  ;;  %v4609_v49 = vld [vmem:[%s4675_s25 + $0x159] sm:$0xff] }
 0x2d4   : > { %3346 = vst.msk [vmem:[%s5252_s16 + $0x30] sm:$0xff] %vm335_vm1, %v3314_v9  ;;  %v3315_v12 = vadd.f32 %v4589_v51, %v4283_v32  ;;  %v3200_v13 = vpop.f32.mrb[39].mxu1  ;;  %v4610_v32 = vld [vmem:[%s4675_s25 + $0x141] sm:$0xff] }
 0x2d5   : > { %3344 = vst.msk [vmem:[%s5252_s16 + $0x20] sm:$0xff] %vm335_vm1, %v3312_v26  ;;  %v3313_v14 = vadd.f32 %v4590_v50, %v3200_v13  ;;  %v4611_v13 = vld [vmem:[%s4675_s25 + $0x181] sm:$0xff] }
 0x2d6   : > { %3347 = vst.msk [vmem:[%s5252_s16 + $0x38] sm:$0xff] %vm335_vm1, %v3315_v12 }
 0x2d7   : > { %3345 = vst.msk [vmem:[%s5252_s16 + $0x28] sm:$0xff] %vm335_vm1, %v3313_v14 }
 0x2d9   : > { %v4286_v54 = vpop.f32.mrb[40].mxu1 }
 0x2da   : > { %v3318_v59 = vadd.f32 %v4591_v21, %v4286_v54  ;;  %v3213_v19 = vpop.f32.mrb[41].mxu1  ;;  %v4612_v54 = vld [vmem:[%s4675_s25 + $0x169] sm:$0xff] }
 0x2db   : > { %v3316_v45 = vadd.f32 %v4592_v22, %v3213_v19  ;;  %v4287_v27 = vpop.f32.mrb[42].mxu1  ;;  %v4613_v19 = vld [vmem:[%s4675_s25 + $0x189] sm:$0xff] }
 0x2dc   : > { %3350 = vst.msk [vmem:[%s5252_s16 + $0x50] sm:$0xff] %vm335_vm1, %v3318_v59  ;;  %v3319_v29 = vadd.f32 %v4593_v53, %v4287_v27  ;;  %v3216_v15 = vpop.f32.mrb[43].mxu1  ;;  %v4614_v27 = vld [vmem:[%s4675_s25 + $0x171] sm:$0xff] }
 0x2dd   : > { %3348 = vst.msk [vmem:[%s5252_s16 + $0x40] sm:$0xff] %vm335_vm1, %v3316_v45  ;;  %v3317_v33 = vadd.f32 %v4594_v31, %v3216_v15 }
 0x2de   : > { %3351 = vst.msk [vmem:[%s5252_s16 + $0x58] sm:$0xff] %vm335_vm1, %v3319_v29 }
 0x2df   : > { %3349 = vst.msk [vmem:[%s5252_s16 + $0x48] sm:$0xff] %vm335_vm1, %v3317_v33 }
 0x2e1   : > { %v4290_v39 = vpop.f32.mrb[44].mxu1 }
 0x2e2   : > { %v3322_v35 = vadd.f32 %v4595_v34, %v4290_v39  ;;  %v3229_v36 = vpop.f32.mrb[45].mxu1 }
 0x2e3   : > { %v3320_v60 = vadd.f32 %v4596_v61, %v3229_v36  ;;  %v4291_v57 = vpop.f32.mrb[46].mxu1 }
 0x2e4   : > { %3354 = vst.msk [vmem:[%s5252_s16 + $0x70] sm:$0xff] %vm335_vm1, %v3322_v35  ;;  %v3323_v37 = vadd.f32 %v4597_v1, %v4291_v57  ;;  %v3232_v17 = vpop.f32.mrb[47].mxu1 }
 0x2e5   : > { %3352 = vst.msk [vmem:[%s5252_s16 + $0x60] sm:$0xff] %vm335_vm1, %v3320_v60  ;;  %v3321_v20 = vadd.f32 %v4598_v16, %v3232_v17 }
 0x2e6   : > { %3355 = vst.msk [vmem:[%s5252_s16 + $0x78] sm:$0xff] %vm335_vm1, %v3323_v37 }
 0x2e7   : > { %3353 = vst.msk [vmem:[%s5252_s16 + $0x68] sm:$0xff] %vm335_vm1, %v3321_v20 }
 0x2e9   : > { %v4294_v6 = vpop.f32.mrb[48].mxu1 }
 0x2ea   : > { %v3326_v11 = vadd.f32 %v4599_v25, %v4294_v6  ;;  %v3245_v30 = vpop.f32.mrb[49].mxu1 }
 0x2eb   : > { %v3324_v52 = vadd.f32 %v4600_v18, %v3245_v30  ;;  %v4295_v38 = vpop.f32.mrb[50].mxu1 }
 0x2ec   : > { %3358 = vst.msk [vmem:[%s5252_s16 + $0x90] sm:$0xff] %vm335_vm1, %v3326_v11  ;;  %v3327_v40 = vadd.f32 %v4601_v23, %v4295_v38  ;;  %v3248_v44 = vpop.f32.mrb[51].mxu1 }
 0x2ed   : > { %3356 = vst.msk [vmem:[%s5252_s16 + $0x80] sm:$0xff] %vm335_vm1, %v3324_v52  ;;  %v3325_v42 = vadd.f32 %v4602_v55, %v3248_v44 }
 0x2ee   : > { %3359 = vst.msk [vmem:[%s5252_s16 + $0x98] sm:$0xff] %vm335_vm1, %v3327_v40 }
 0x2ef   : > { %3357 = vst.msk [vmem:[%s5252_s16 + $0x88] sm:$0xff] %vm335_vm1, %v3325_v42 }
 0x2f1   : > { %v4298_v56 = vpop.f32.mrb[52].mxu1 }
 0x2f2   : > { %v3330_v28 = vadd.f32 %v4603_v46, %v4298_v56  ;;  %v3261_v58 = vpop.f32.mrb[53].mxu1 }
 0x2f3   : > { %v3328_v0 = vadd.f32 %v4604_v41, %v3261_v58  ;;  %v4299_v63 = vpop.f32.mrb[54].mxu1 }
 0x2f4   : > { %3362 = vst.msk [vmem:[%s5252_s16 + $0xb0] sm:$0xff] %vm335_vm1, %v3330_v28  ;;  %v3331_v62 = vadd.f32 %v4605_v2, %v4299_v63  ;;  %v3264_v24 = vpop.f32.mrb[55].mxu1 }
 0x2f5   : > { %3360 = vst.msk [vmem:[%s5252_s16 + $0xa0] sm:$0xff] %vm335_vm1, %v3328_v0  ;;  %v3329_v4 = vadd.f32 %v4606_v3, %v3264_v24 }
 0x2f6   : > { %3363 = vst.msk [vmem:[%s5252_s16 + $0xb8] sm:$0xff] %vm335_vm1, %v3331_v62 }
 0x2f7   : > { %3361 = vst.msk [vmem:[%s5252_s16 + $0xa8] sm:$0xff] %vm335_vm1, %v3329_v4 }
 0x2f9   : > { %v4302_v43 = vpop.f32.mrb[56].mxu1 }
 0x2fa   : > { %v3334_v48 = vadd.f32 %v4607_v5, %v4302_v43  ;;  %v3277_v7 = vpop.f32.mrb[57].mxu1 }
 0x2fb   : > { %v3332_v47 = vadd.f32 %v4608_v8, %v3277_v7  ;;  %v4303_v9 = vpop.f32.mrb[58].mxu1 }
 0x2fc   : > { %3366 = vst.msk [vmem:[%s5252_s16 + $0xd0] sm:$0xff] %vm335_vm1, %v3334_v48  ;;  %v3335_v10 = vadd.f32 %v4609_v49, %v4303_v9  ;;  %v3280_v26 = vpop.f32.mrb[59].mxu1 }
 0x2fd   : > { %3364 = vst.msk [vmem:[%s5252_s16 + $0xc0] sm:$0xff] %vm335_vm1, %v3332_v47  ;;  %v3333_v51 = vadd.f32 %v4610_v32, %v3280_v26 }
 0x2fe   : > { %3367 = vst.msk [vmem:[%s5252_s16 + $0xd8] sm:$0xff] %vm335_vm1, %v3335_v10 }
 0x2ff   : > { %3365 = vst.msk [vmem:[%s5252_s16 + $0xc8] sm:$0xff] %vm335_vm1, %v3333_v51 }
 0x301   : > { %v4306_v12 = vpop.f32.mrb[60].mxu1 }
 0x302   : > { %v3338_v50 = vadd.f32 %v4611_v13, %v4306_v12  ;;  %v3293_v14 = vpop.f32.mrb[61].mxu1 }
 0x303   : > { %v3336_v21 = vadd.f32 %v4612_v54, %v3293_v14  ;;  %v4307_v59 = vpop.f32.mrb[62].mxu1 }
 0x304   : > { %3370 = vst.msk [vmem:[%s5252_s16 + $0xf0] sm:$0xff] %vm335_vm1, %v3338_v50  ;;  %v3339_v22 = vadd.f32 %v4613_v19, %v4307_v59  ;;  %v3296_v45 = vpop.f32.mrb[63].mxu1 }
 0x305   : > { %3368 = vst.msk [vmem:[%s5252_s16 + $0xe0] sm:$0xff] %vm335_vm1, %v3336_v21  ;;  %v3337_v53 = vadd.f32 %v4614_v27, %v3296_v45 }
 0x306   : > { %3371 = vst.msk [vmem:[%s5252_s16 + $0xf8] sm:$0xff] %vm335_vm1, %v3339_v22 }
 0x307   : > { %3369 = vst.msk [vmem:[%s5252_s16 + $0xe8] sm:$0xff] %vm335_vm1, %v3337_v53 }
 0x308 PF: > { %s13_s12 = sadd.s32 1, %s4621_s12  }
 0x309   : > { %p10_p4 = scmp.ge.s32.totalorder %s13_s12, 4  }
 0x30b   :  { %12 = sbr.rel (!%p10_p4) target bundleno = 1 (0x1), region = 72 }

</bundles_post_ra>
